<compile_context>
chip_gen: v6e
topology: v6e:2x2x1
jax: 0.10.0
libtpu: 0.0.40
codegen_flags: <defaults>
</compile_context>

<pallas_src>
import jax
import jax.numpy as jnp
from jax.experimental import pallas as pl
from jax.experimental.pallas import tpu as pltpu


def _round_up(x, m):
    return ((x + m - 1) // m) * m


def edge_sage_conv(feat, edge_feats, adj, inc, w_self, w_neigh, bias, *,
                   tm=128, tk=512, compute_dtype=jnp.bfloat16):
    """EdgeSAGEConv forward (aggregator='mean', edge_func='cat', feat_drop=0, bias=True).

    feat:       (N, D)        node features (homogeneous graph: src == dst nodes)
    edge_feats: (E, De)       edge features
    adj:        (N_dst, N_src) dense edge-multiplicity matrix, adj[v, u] = #edges u->v
    inc:        (N_dst, E)     dense dst incidence, inc[v, e] = 1 if edge e -> v
    w_self:     (D, F), w_neigh: (D+De, F), bias: (F,)

    NOTE: must be called eagerly (the grid extent depends on the tile-sparsity
    pattern).  Tile guidance: v5e tm=128; v6e/v7x tm=256 when N is large enough
    for >= 2 row blocks; tk: sweep 512-2048.
    """
    N, D = feat.shape
    E, De = edge_feats.shape
    F = w_self.shape[1]
    f32 = jnp.float32

    Dp = _round_up(D, 128)          # padded node-feature width
    Dep = _round_up(De, 128)        # padded edge-feature width
    Fp = _round_up(F, 128)          # padded output width (lane-dense stores)
    W = max(Dp, Dep)                # streamed srcx block width (phase-split)
    DDp = Dp + Dep                  # accumulator width: [neigh_node | neigh_edge]

    Np = _round_up(N, tm)           # padded dst-node axis
    Nsp = _round_up(N, tk)          # padded src-node axis (node phase of K)
    Ep = _round_up(E, tk)           # padded edge axis     (edge phase of K)
    Kp = Nsp + Ep
    kn = Nsp // tk                  # number of node-phase K tiles
    n_i = Np // tm
    n_k = Kp // tk

    # --- epilogue scalars: in-degree reciprocal (f32; zero-in-degree -> 0, as DGL) ---
    deg = jnp.sum(adj.astype(f32), axis=1)
    inv_deg = jnp.where(deg > 0, 1.0 / deg, 0.0).astype(f32)
    inv_deg_p = jnp.zeros((Np, 1), f32).at[:N, 0].set(inv_deg)

    # --- dense padded operands (bf16 for the MXU; edge counts exact in bf16 <= 256) ---
    featd = jnp.zeros((Np, Dp), compute_dtype).at[:N, :D].set(feat.astype(compute_dtype))

    # combined aggregation operator  [ adj | inc ]
    agg = jnp.zeros((Np, Kp), compute_dtype)
    agg = agg.at[:N, :N].set(adj.astype(compute_dtype))
    agg = agg.at[:N, Nsp:Nsp + E].set(inc.astype(compute_dtype))

    # phase-split source operand: rows [0:N) node feats, rows [Nsp:Nsp+E) edge feats
    srcx = jnp.zeros((Kp, W), compute_dtype)
    srcx = srcx.at[:N, :D].set(feat.astype(compute_dtype))
    srcx = srcx.at[Nsp:Nsp + E, :De].set(edge_feats.astype(compute_dtype))

    w_self_p = jnp.zeros((Dp, Fp), compute_dtype).at[:D, :F].set(w_self.astype(compute_dtype))
    w_neigh_p = jnp.zeros((DDp, Fp), compute_dtype)
    w_neigh_p = w_neigh_p.at[:D, :F].set(w_neigh[:D].astype(compute_dtype))
    w_neigh_p = w_neigh_p.at[Dp:Dp + De, :F].set(w_neigh[D:].astype(compute_dtype))
    bias_p = jnp.zeros((1, Fp), f32).at[0, :F].set(bias.astype(f32))

    # --- block-sparsity metadata (scalar-prefetched into SMEM) -----------------------
    # For every (row tile i, K tile k): does the agg tile contain any nonzero?
    tile_nz = jnp.any(agg.reshape(n_i, tm, n_k, tk) != 0, axis=(1, 3))        # (n_i, n_k)
    counts = tile_nz.sum(axis=1).astype(jnp.int32)                            # nnz K tiles / row tile
    # Compacted per-row-tile list of nonzero K-tile indices, padded by repeating the
    # last valid index (unchanged block index -> no extra DMA; compute is pl.when-skipped).
    keys = jnp.where(tile_nz, jnp.arange(n_k, dtype=jnp.int32)[None, :], n_k)
    sorted_keys = jnp.sort(keys, axis=1)
    last = jnp.take_along_axis(sorted_keys, jnp.maximum(counts - 1, 0)[:, None], axis=1)
    kidx_full = jnp.where(jnp.arange(n_k)[None, :] < counts[:, None], sorted_keys, last)
    kidx_full = jnp.minimum(kidx_full, n_k - 1)      # rows with zero nnz -> safe in-range index

    grid_k = max(int(jnp.max(counts)), 1)            # static K-grid extent (eager only)
    kidx = kidx_full[:, :grid_k].astype(jnp.int32).reshape(-1)   # flat (n_i * grid_k,) in SMEM

    # --- kernel ----------------------------------------------------------------------
    def kernel(kidx_ref, cnt_ref, inv_deg_ref, featd_ref, agg_ref, srcx_ref,
               wself_ref, wneigh_ref, bias_ref, out_ref, acc_ref):
        i = pl.program_id(0)
        slot = pl.program_id(1)
        kact = kidx_ref[i * grid_k + slot]       # actual K-tile index for this slot
        valid = slot < cnt_ref[i]                # padding slots carry no work
        is_node = kact < kn                      # node phase vs edge phase

        @pl.when(slot == 0)
        def _init():
            acc_ref[...] = jnp.zeros_like(acc_ref)

        # node phase:  acc[:, :Dp] += adj_tile @ feat_tile
        @pl.when(jnp.logical_and(valid, is_node))
        def _node():
            acc_ref[:, :Dp] += jnp.dot(agg_ref[...], srcx_ref[:, :Dp],
                                       preferred_element_type=jnp.float32)

        # edge phase:  acc[:, Dp:] += inc_tile @ efeat_tile
        @pl.when(jnp.logical_and(valid, jnp.logical_not(is_node)))
        def _edge():
            acc_ref[:, Dp:] += jnp.dot(agg_ref[...], srcx_ref[:, :Dep],
                                       preferred_element_type=jnp.float32)

        @pl.when(slot == pl.num_programs(1) - 1)
        def _finalize():
            # mean aggregation (inv_deg == 0 for zero-in-degree rows, like DGL)
            h_neigh = (acc_ref[...] * inv_deg_ref[...]).astype(wneigh_ref.dtype)
            out = jnp.dot(featd_ref[...], wself_ref[...],
                          preferred_element_type=jnp.float32)
            out += jnp.dot(h_neigh, wneigh_ref[...],
                           preferred_element_type=jnp.float32)
            out_ref[...] = out + bias_ref[...]

    out = pl.pallas_call(
        kernel,
        out_shape=jax.ShapeDtypeStruct((Np, Fp), f32),
        grid_spec=pltpu.PrefetchScalarGridSpec(
            num_scalar_prefetch=2,
            grid=(n_i, grid_k),
            in_specs=[
                pl.BlockSpec((tm, 1), lambda i, k, kx, ct: (i, 0)),         # inv_deg (f32)
                pl.BlockSpec((tm, Dp), lambda i, k, kx, ct: (i, 0)),        # self feats (resident / i)
                pl.BlockSpec((tm, tk),                                       # [adj|inc], gathered nz tiles
                             lambda i, k, kx, ct: (i, kx[i * grid_k + k])),
                pl.BlockSpec((tk, W),                                        # [feat;efeat], gathered nz tiles
                             lambda i, k, kx, ct: (kx[i * grid_k + k], 0)),
                pl.BlockSpec((Dp, Fp), lambda i, k, kx, ct: (0, 0)),        # W_self   (resident)
                pl.BlockSpec((DDp, Fp), lambda i, k, kx, ct: (0, 0)),       # W_neigh  (resident)
                pl.BlockSpec((1, Fp), lambda i, k, kx, ct: (0, 0)),         # bias     (resident)
            ],
            out_specs=pl.BlockSpec((tm, Fp), lambda i, k, kx, ct: (i, 0)),
            scratch_shapes=[pltpu.VMEM((tm, DDp), f32)],
        ),
        compiler_params=pltpu.CompilerParams(
            dimension_semantics=("parallel", "arbitrary"),
            # <= ~48 MiB keeps headroom on v7x (64 MiB physical VMEM); plenty on v5e/v6e.
            vmem_limit_bytes=48 * 1024 * 1024,
        ),
    )(kidx, counts, inv_deg_p, featd, agg, srcx, w_self_p, w_neigh_p, bias_p)

    return out[:N, :F]


def _glorot(key, shape, gain):
    fan_in, fan_out = shape[0], shape[1]
    limit = gain * jnp.sqrt(6.0 / (fan_in + fan_out))
    return jax.random.uniform(key, shape, jnp.float32, -limit, limit)


def _reference(feat, edge_feats, src, dst, w_self, w_neigh, bias, n_nodes):
    # pure-JAX reference: segment mean of concatenated [feat_src || efeat] messages
    msgs = jnp.concatenate([feat[src], edge_feats], axis=-1)          # (E, D+De)
    summed = jax.ops.segment_sum(msgs, dst, num_segments=n_nodes)     # (N, D+De)
    deg = jax.ops.segment_sum(jnp.ones_like(dst, jnp.float32), dst,
                              num_segments=n_nodes)
    inv = jnp.where(deg > 0, 1.0 / deg, 0.0)[:, None]
    h_neigh = summed * inv
    return feat @ w_self + h_neigh @ w_neigh + bias[None, :]


if __name__ == "__main__":
    key = jax.random.PRNGKey(0)
    N, D, De, E, F = 16, 32, 16, 64, 32   # nodes, in_feats, edge_feats, edges, out_feats

    k_feat, k_ef, k_src, k_dst, k_ws, k_wn = jax.random.split(key, 6)

    feat = jax.random.normal(k_feat, (N, D), jnp.float32)
    edge_feats = jax.random.normal(k_ef, (E, De), jnp.float32)

    # random directed graph (src -> dst) as dense adjacency counts + incidence
    src = jax.random.randint(k_src, (E,), 0, N)
    dst = jax.random.randint(k_dst, (E,), 0, N)
    adj = jnp.zeros((N, N), jnp.float32).at[dst, src].add(1.0)            # (N_dst, N_src)
    inc = jnp.zeros((N, E), jnp.float32).at[dst, jnp.arange(E)].add(1.0)  # (N_dst, E)

    # deterministic Glorot-uniform weights (relu gain), zero bias as in __init__
    gain = jnp.sqrt(2.0)
    w_self = _glorot(k_ws, (D, F), gain)          # fc_self: (D -> F), no bias
    w_neigh = _glorot(k_wn, (D + De, F), gain)    # fc_neigh: (D+De -> F), no bias
    bias = jnp.zeros((F,), jnp.float32)           # module bias parameter

    out = edge_sage_conv(feat, edge_feats, adj, inc, w_self, w_neigh, bias)
    out = jax.block_until_ready(out)

    # reference on the same bf16-rounded operands (kernel runs its matmuls in bf16
    # with f32 accumulation); loosened tolerance covers the bf16 rounding.
    bf = lambda x: x.astype(jnp.bfloat16).astype(jnp.float32)
    ref = _reference(bf(feat), bf(edge_feats), src, dst, bf(w_self), bf(w_neigh),
                     bias, N)

    assert out.shape == (N, F)
    assert jnp.allclose(out, ref, atol=2e-2, rtol=2e-2), \
        float(jnp.max(jnp.abs(out - ref)))

    print("KERNEL_OK")
</pallas_src>

<mosaic_0001>
module attributes {stable_mosaic.version = 11 : i64} {
  func.func @kernel(%arg0: i32, %arg1: i32, %arg2: memref<2xi32, #tpu.memory_space<smem>>, %arg3: memref<1xi32, #tpu.memory_space<smem>>, %arg4: memref<128x1xf32, #tpu.memory_space<vmem>>, %arg5: memref<128x128xbf16, #tpu.memory_space<vmem>>, %arg6: memref<128x512xbf16, #tpu.memory_space<vmem>>, %arg7: memref<512x128xbf16, #tpu.memory_space<vmem>>, %arg8: memref<128x128xbf16, #tpu.memory_space<vmem>>, %arg9: memref<256x128xbf16, #tpu.memory_space<vmem>>, %arg10: memref<1x128xf32, #tpu.memory_space<vmem>>, %arg11: memref<128x128xf32, #tpu.memory_space<vmem>>, %arg12: memref<128x256xf32, #tpu.memory_space<vmem>>) attributes {dimension_semantics = [#tpu.dimension_semantics<parallel>, #tpu.dimension_semantics<arbitrary>], iteration_bounds = array<i64: 1, 2>, scalar_prefetch = 2 : i64, scratch_operands = 1 : i64, tpu.core_type = #tpu.core_type<tc>, window_params = [{transform_indices = @transform_0, window_bounds = array<i64: 128, 1>}, {transform_indices = @transform_1, window_bounds = array<i64: 128, 128>}, {transform_indices = @transform_2, window_bounds = array<i64: 128, 512>}, {transform_indices = @transform_3, window_bounds = array<i64: 512, 128>}, {pipeline_mode = #tpu.pipeline_mode<synchronous>, transform_indices = @transform_4, window_bounds = array<i64: 128, 128>}, {pipeline_mode = #tpu.pipeline_mode<synchronous>, transform_indices = @transform_5, window_bounds = array<i64: 256, 128>}, {pipeline_mode = #tpu.pipeline_mode<synchronous>, transform_indices = @transform_6, window_bounds = array<i64: 1, 128>}, {transform_indices = @transform_7, window_bounds = array<i64: 128, 128>}]} {
    %c2_i32 = arith.constant 2 : i32
    %0 = arith.muli %arg0, %c2_i32 : i32
    %1 = arith.addi %0, %arg1 : i32
    %2 = arith.index_cast %1 : i32 to index
    %3 = memref.load %arg2[%2] : memref<2xi32, #tpu.memory_space<smem>>
    %4 = arith.index_cast %arg0 : i32 to index
    %5 = memref.load %arg3[%4] : memref<1xi32, #tpu.memory_space<smem>>
    %6 = arith.cmpi slt, %arg1, %5 : i32
    %c1_i32 = arith.constant 1 : i32
    %7 = arith.cmpi slt, %3, %c1_i32 : i32
    %c0_i32 = arith.constant 0 : i32
    %8 = arith.cmpi eq, %arg1, %c0_i32 : i32
    %9 = arith.extui %8 : i1 to i32
    %c0_i32_0 = arith.constant 0 : i32
    %10 = arith.cmpi ne, %9, %c0_i32_0 : i32
    scf.if %10 {
      %cst = arith.constant 0.000000e+00 : f32
      %21 = vector.broadcast %cst : f32 to vector<128x256xf32>
      %c0 = arith.constant 0 : index
      %c0_5 = arith.constant 0 : index
      %22 = vector.load %arg12[%c0, %c0_5] : memref<128x256xf32, #tpu.memory_space<vmem>>, vector<128x256xf32>
      tpu.vector_store %arg12[%c0, %c0_5], %21 {strides = array<i32>} : memref<128x256xf32, #tpu.memory_space<vmem>>, vector<128x256xf32>,
    } else {
    }
    %11 = arith.andi %6, %7 : i1
    %12 = arith.extui %11 : i1 to i32
    %c0_i32_1 = arith.constant 0 : i32
    %13 = arith.cmpi ne, %12, %c0_i32_1 : i32
    scf.if %13 {
      %c0 = arith.constant 0 : index
      %c0_5 = arith.constant 0 : index
      %21 = vector.load %arg12[%c0, %c0_5] : memref<128x256xf32, #tpu.memory_space<vmem>>, vector<128x128xf32>
      %c0_6 = arith.constant 0 : index
      %c0_7 = arith.constant 0 : index
      %22 = vector.load %arg6[%c0_6, %c0_7] : memref<128x512xbf16, #tpu.memory_space<vmem>>, vector<128x512xbf16>
      %c0_8 = arith.constant 0 : index
      %c0_9 = arith.constant 0 : index
      %23 = vector.load %arg7[%c0_8, %c0_9] : memref<512x128xbf16, #tpu.memory_space<vmem>>, vector<512x128xbf16>
      %cst = arith.constant dense<0.000000e+00> : vector<128x128xf32>
      %24 = tpu.matmul %22, %23, %cst {dimension_numbers = #tpu.dot_dimension_numbers<[1], [0], [0], [1], [0, 0, 1, 1], [], []>} : vector<128x512xbf16>, vector<512x128xbf16>, vector<128x128xf32> -> vector<128x128xf32>
      %25 = arith.addf %21, %24 : vector<128x128xf32>
      %c0_10 = arith.constant 0 : index
      %c0_11 = arith.constant 0 : index
      %26 = vector.load %arg12[%c0_10, %c0_11] : memref<128x256xf32, #tpu.memory_space<vmem>>, vector<128x128xf32>
      tpu.vector_store %arg12[%c0_10, %c0_11], %25 {strides = array<i32>} : memref<128x256xf32, #tpu.memory_space<vmem>>, vector<128x128xf32>,
    } else {
    }
    %true = arith.constant true
    %14 = arith.xori %7, %true : i1
    %15 = arith.andi %6, %14 : i1
    %16 = arith.extui %15 : i1 to i32
    %c0_i32_2 = arith.constant 0 : i32
    %17 = arith.cmpi ne, %16, %c0_i32_2 : i32
    scf.if %17 {
      %c0 = arith.constant 0 : index
      %c128 = arith.constant 128 : index
      %21 = vector.load %arg12[%c0, %c128] : memref<128x256xf32, #tpu.memory_space<vmem>>, vector<128x128xf32>
      %c0_5 = arith.constant 0 : index
      %c0_6 = arith.constant 0 : index
      %22 = vector.load %arg6[%c0_5, %c0_6] : memref<128x512xbf16, #tpu.memory_space<vmem>>, vector<128x512xbf16>
      %c0_7 = arith.constant 0 : index
      %c0_8 = arith.constant 0 : index
      %23 = vector.load %arg7[%c0_7, %c0_8] : memref<512x128xbf16, #tpu.memory_space<vmem>>, vector<512x128xbf16>
      %cst = arith.constant dense<0.000000e+00> : vector<128x128xf32>
      %24 = tpu.matmul %22, %23, %cst {dimension_numbers = #tpu.dot_dimension_numbers<[1], [0], [0], [1], [0, 0, 1, 1], [], []>} : vector<128x512xbf16>, vector<512x128xbf16>, vector<128x128xf32> -> vector<128x128xf32>
      %25 = arith.addf %21, %24 : vector<128x128xf32>
      %c0_9 = arith.constant 0 : index
      %c128_10 = arith.constant 128 : index
      %26 = vector.load %arg12[%c0_9, %c128_10] : memref<128x256xf32, #tpu.memory_space<vmem>>, vector<128x128xf32>
      tpu.vector_store %arg12[%c0_9, %c128_10], %25 {strides = array<i32>} : memref<128x256xf32, #tpu.memory_space<vmem>>, vector<128x128xf32>,
    } else {
    }
    %c1_i32_3 = arith.constant 1 : i32
    %18 = arith.cmpi eq, %arg1, %c1_i32_3 : i32
    %19 = arith.extui %18 : i1 to i32
    %c0_i32_4 = arith.constant 0 : i32
    %20 = arith.cmpi ne, %19, %c0_i32_4 : i32
    scf.if %20 {
      %c0 = arith.constant 0 : index
      %c0_5 = arith.constant 0 : index
      %21 = vector.load %arg12[%c0, %c0_5] : memref<128x256xf32, #tpu.memory_space<vmem>>, vector<128x256xf32>
      %c0_6 = arith.constant 0 : index
      %c0_7 = arith.constant 0 : index
      %22 = vector.load %arg4[%c0_6, %c0_7] : memref<128x1xf32, #tpu.memory_space<vmem>>, vector<128x1xf32>
      %23 = vector.broadcast %22 : vector<128x1xf32> to vector<128x256xf32>
      %24 = arith.mulf %21, %23 : vector<128x256xf32>
      %25 = arith.truncf %24 : vector<128x256xf32> to vector<128x256xbf16>
      %c0_8 = arith.constant 0 : index
      %c0_9 = arith.constant 0 : index
      %26 = vector.load %arg5[%c0_8, %c0_9] : memref<128x128xbf16, #tpu.memory_space<vmem>>, vector<128x128xbf16>
      %c0_10 = arith.constant 0 : index
      %c0_11 = arith.constant 0 : index
      %27 = vector.load %arg8[%c0_10, %c0_11] : memref<128x128xbf16, #tpu.memory_space<vmem>>, vector<128x128xbf16>
      %cst = arith.constant dense<0.000000e+00> : vector<128x128xf32>
      %28 = tpu.matmul %26, %27, %cst {dimension_numbers = #tpu.dot_dimension_numbers<[1], [0], [0], [1], [0, 0, 1, 1], [], []>} : vector<128x128xbf16>, vector<128x128xbf16>, vector<128x128xf32> -> vector<128x128xf32>
      %c0_12 = arith.constant 0 : index
      %c0_13 = arith.constant 0 : index
      %29 = vector.load %arg9[%c0_12, %c0_13] : memref<256x128xbf16, #tpu.memory_space<vmem>>, vector<256x128xbf16>
      %cst_14 = arith.constant dense<0.000000e+00> : vector<128x128xf32>
      %30 = tpu.matmul %25, %29, %cst_14 {dimension_numbers = #tpu.dot_dimension_numbers<[1], [0], [0], [1], [0, 0, 1, 1], [], []>} : vector<128x256xbf16>, vector<256x128xbf16>, vector<128x128xf32> -> vector<128x128xf32>
      %31 = arith.addf %28, %30 : vector<128x128xf32>
      %c0_15 = arith.constant 0 : index
      %c0_16 = arith.constant 0 : index
      %32 = vector.load %arg10[%c0_15, %c0_16] : memref<1x128xf32, #tpu.memory_space<vmem>>, vector<1x128xf32>
      %33 = vector.broadcast %32 : vector<1x128xf32> to vector<128x128xf32>
      %34 = arith.addf %31, %33 : vector<128x128xf32>
      %c0_17 = arith.constant 0 : index
      %c0_18 = arith.constant 0 : index
      %35 = vector.load %arg11[%c0_17, %c0_18] : memref<128x128xf32, #tpu.memory_space<vmem>>, vector<128x128xf32>
      tpu.vector_store %arg11[%c0_17, %c0_18], %34 {strides = array<i32>} : memref<128x128xf32, #tpu.memory_space<vmem>>, vector<128x128xf32>,
    } else {
    }
    return
  }
  func.func @transform_0(%arg0: i32, %arg1: i32, %arg2: memref<2xi32, #tpu.memory_space<smem>>, %arg3: memref<1xi32, #tpu.memory_space<smem>>) -> (i32, i32) {
    %c0_i32 = arith.constant 0 : i32
    %c0_i32_0 = arith.constant 0 : i32
    return %arg0, %c0_i32 : i32, i32
  }
  func.func @transform_1(%arg0: i32, %arg1: i32, %arg2: memref<2xi32, #tpu.memory_space<smem>>, %arg3: memref<1xi32, #tpu.memory_space<smem>>) -> (i32, i32) {
    %c0_i32 = arith.constant 0 : i32
    %c0_i32_0 = arith.constant 0 : i32
    return %arg0, %c0_i32 : i32, i32
  }
  func.func @transform_2(%arg0: i32, %arg1: i32, %arg2: memref<2xi32, #tpu.memory_space<smem>>, %arg3: memref<1xi32, #tpu.memory_space<smem>>) -> (i32, i32) {
    %c2_i32 = arith.constant 2 : i32
    %0 = arith.muli %arg0, %c2_i32 : i32
    %1 = arith.addi %0, %arg1 : i32
    %2 = arith.index_cast %1 : i32 to index
    %3 = memref.load %arg2[%2] : memref<2xi32, #tpu.memory_space<smem>>
    %c0_i32 = arith.constant 0 : i32
    return %arg0, %3 : i32, i32
  }
  func.func @transform_3(%arg0: i32, %arg1: i32, %arg2: memref<2xi32, #tpu.memory_space<smem>>, %arg3: memref<1xi32, #tpu.memory_space<smem>>) -> (i32, i32) {
    %c2_i32 = arith.constant 2 : i32
    %0 = arith.muli %arg0, %c2_i32 : i32
    %1 = arith.addi %0, %arg1 : i32
    %2 = arith.index_cast %1 : i32 to index
    %3 = memref.load %arg2[%2] : memref<2xi32, #tpu.memory_space<smem>>
    %c0_i32 = arith.constant 0 : i32
    %c0_i32_0 = arith.constant 0 : i32
    return %3, %c0_i32 : i32, i32
  }
  func.func @transform_4(%arg0: i32, %arg1: i32, %arg2: memref<2xi32, #tpu.memory_space<smem>>, %arg3: memref<1xi32, #tpu.memory_space<smem>>) -> (i32, i32) {
    %c0_i32 = arith.constant 0 : i32
    %c0_i32_0 = arith.constant 0 : i32
    %c0_i32_1 = arith.constant 0 : i32
    return %c0_i32, %c0_i32_0 : i32, i32
  }
  func.func @transform_5(%arg0: i32, %arg1: i32, %arg2: memref<2xi32, #tpu.memory_space<smem>>, %arg3: memref<1xi32, #tpu.memory_space<smem>>) -> (i32, i32) {
    %c0_i32 = arith.constant 0 : i32
    %c0_i32_0 = arith.constant 0 : i32
    %c0_i32_1 = arith.constant 0 : i32
    return %c0_i32, %c0_i32_0 : i32, i32
  }
  func.func @transform_6(%arg0: i32, %arg1: i32, %arg2: memref<2xi32, #tpu.memory_space<smem>>, %arg3: memref<1xi32, #tpu.memory_space<smem>>) -> (i32, i32) {
    %c0_i32 = arith.constant 0 : i32
    %c0_i32_0 = arith.constant 0 : i32
    %c0_i32_1 = arith.constant 0 : i32
    return %c0_i32, %c0_i32_0 : i32, i32
  }
  func.func @transform_7(%arg0: i32, %arg1: i32, %arg2: memref<2xi32, #tpu.memory_space<smem>>, %arg3: memref<1xi32, #tpu.memory_space<smem>>) -> (i32, i32) {
    %c0_i32 = arith.constant 0 : i32
    %c0_i32_0 = arith.constant 0 : i32
    return %arg0, %c0_i32 : i32, i32
  }
}

</mosaic_0001>

<bundles_post_ra>
// kernel: tpu_custom_call.1
= control target key start
LH: loop header
LB: loop body
LE: loop exit
PB: predicated region body
PF: predicated region fallthrough
CT: control target
= control target key end

     0   :  { %s4425_s0 = inlined_call_operand.vmem [shape: s32[2], index: 0, kind: input, shape index: {}]   ;;  %s4426_s1 = inlined_call_operand.<no memory space> [shape: s32[1], index: 1, kind: input, shape index: {}]   ;;  %s4427_s2 = inlined_call_operand.vmem [shape: f32[128,1], index: 2, kind: input, shape index: {}]   ;;  %s4428_s3 = inlined_call_operand.hbm [shape: bf16[128,128], index: 3, kind: input, shape index: {}]   ;;  %s4429_s4 = inlined_call_operand.hbm [shape: bf16[128,1024], index: 4, kind: input, shape index: {}]   ;;  %s4430_s5 = inlined_call_operand.hbm [shape: bf16[1024,128], index: 5, kind: input, shape index: {}]   ;;  %s4431_s6 = inlined_call_operand.hbm [shape: bf16[128,128], index: 6, kind: input, shape index: {}]   ;;  %s4432_s7 = inlined_call_operand.vmem [shape: bf16[256,128], index: 7, kind: input, shape index: {}]   ;;  %s4433_s8 = inlined_call_operand.vmem [shape: f32[1,128], index: 8, kind: input, shape index: {}]   ;;  %s4434_s9 = inlined_call_operand.hbm [shape: f32[128,128], index: 9, kind: output, shape index: {}]  }
   0x1   :  { %4443 = sst [smem:[#allocation25_spill]] %s4428_s3  ;;  %s14_s11 = sshll.u32 %s4425_s0, 4  ;;  %s15_s11 = int_to_ptr.vmem [resolvable:$true] %s14_s11 }
   0x2   :  { %4444 = sst [smem:[#allocation26_spill]] %s4432_s7  ;;  %s3556_s14 = scalar_lea.vmem %s15_s11, 16 }
   0x3   :  { %4445 = sst [smem:[#allocation27_spill]] %s4433_s8  ;;  %p3557_p0 = scmp.ne.s32.totalorder %s15_s11, %s3556_s14 }
   0x4   :  { %4446 = sst [smem:[#allocation28_spill]] %s4434_s9  ;;  %p3561_p1 = scmp.lt.s32.totalorder %s15_s11, %s15_s11 }
   0x5   :  { %18 = sst [smem:[#allocation5]] %s4426_s1  ;;  %p3562_p2 = scmp.lt.s32.totalorder %s3556_s14, %s3556_s14 }
   0x7   :  { %p3563_p3 = por %p3562_p2, %p3561_p1 }
   0x9   :  { %p3564_p4 = pnand %p3563_p3, %p3557_p0 }
   0xb   :  { %3567 = shalt.err (!%p3564_p4)  }
   0xc   :  { %s3794_s15 = smov [#allocation4]  }
   0xd   :  { %17 = dma.vmem_to_smem %s15_s11, 16, %s3794_s15, [#allocation3] }
   0xe   :  { %3736 = dma.done.wait [#allocation3], 16 }
   0xf   :  { %3737 = vsyncadd [#allocation3], 4294967280 }
  0x10   :  { %20 = sfence }
  0x11   :  { %21 = vsyncpa [#allocation7], 0 }
  0x12   :  { %22 = vsyncpa [#allocation10], 0 }
  0x13   :  { %24 = vsyncpa [#allocation10 + $0x1], 0 }
  0x14   :  { %25 = vsyncpa [#allocation13], 0 }
  0x15   :  { %26 = vsyncpa [#allocation8], 0  ;;  %s3865_s0 = smov 0   ;;  %s3867_s1 = smov 0  }
  0x16   :  { %s3869_s16 = smov 0   ;;  %s3871_s17 = smov 0  }
  0x17   :  { %s3873_s18 = smov 0   ;;  %s3875_s19 = smov 0  }
  0x18   :  { %s3877_s20 = smov 0   ;;  %s3879_s21 = smov 0  }
  0x19   :  { %s3881_s22 = smov 0  }
  0x1a LB: > { %s41_s23 = sadd.s32 1, %s3788_s21  ;;  %s102_s24 = sld [smem:[#allocation4 + %s3788_s21]]  ;;  %s3792_s22 = sphi %s3881_s22, %s32_s22   ;;  %s3788_s21 = sphi %s3879_s21, %s4484_s21   ;;  %s3784_s20 = sphi %s3877_s20, %s4483_s20   ;;  %s3780_s19 = sphi %s3875_s19, %s4482_s19   ;;  %s3776_s18 = sphi %s3873_s18, %s4481_s18   ;;  %s3772_s17 = sphi %s3871_s17, %s4480_s17   ;;  %s3768_s16 = sphi %s3869_s16, %s4479_s16   ;;  %s3764_s1 = sphi %s3867_s1, %s4478_s1   ;;  %s3760_s0 = sphi %s3865_s0, %s4477_s0  }
  0x1b   : > { %p42_p5 = scmp.ge.s32.totalorder %s41_s23, 2  ;;  %s111_s25 = sadd.s32 1, %s3780_s19 }
  0x1c   : > { %p118_p6 = scmp.ne.s32.totalorder %s3780_s19, %s3776_s18  ;;  %p4437_p7 = scmp.eq.s32.totalorder %s3792_s22, 0 }
  0x1d   : > { %s4486_s23 = smov (%p42_p5, %s41_s23), 0  ;;  %s3925_s27 = sld [smem:[#allocation4 + %s3788_s21]] }
  0x1e   : > { %p3920_p8 = por %p4437_p7, %p118_p6  ;;  %s105_s28 = sld [smem:[#allocation4 + %s4486_s23]] }
  0x1f   : > { %p4436_p9 = scmp.lt.s32.totalorder %s3792_s22, 2  ;;  %s313_s29 = sand.u32 1, %s3792_s22  }
  0x20   : > { %s315_s30 = sand.u32 1, %s3780_s19   ;;  %s3954_s7 = sadd.s32 4294967295, %s3792_s22  }
  0x21   : > { %s2684_s10 = sshll.u32 %s315_s30, 8  ;;  %p3935_p10 = pnand %p4436_p9, %p3920_p8 }
  0x22   : > { %s3236_s12 = scalar_select %p3920_p8, [#allocation4], [#allocation15] }
  0x23   : > { %s317_s14 = scalar_lea.vmem [#allocation9], %s2684_s10  ;;  %p3570_p2 = pneg %p3935_p10 }
  0x24   : > { %s107_s13 = ssub.s32 %s102_s24, %s105_s28  ;;  %s330_s15 = sshll.u32 %s317_s14, 4  ;;  %s3941_s15 = int_to_ptr.vmem [resolvable:$true] %s330_s15 }
  0x25   : > { %p109_p11 = scmp.eq.s32.totalorder %s107_s13, 0  ;;  %s4488_s12 = smov (!%p4436_p9, %s3236_s12), [#allocation17] }
  0x26   : > { %s3237_s9 = scalar_select %p3920_p8, %s3788_s21, 0 }
  0x27   : > { %s3947_s30 = scalar_select %p109_p11, %s3780_s19, %s111_s25  }
  0x28   : > { %s4490_s9 = smov (!%p4436_p9, %s3237_s9), 0  ;;  %s3966_s25 = scalar_lea.sflag [#allocation10], %s313_s29 }
  0x29   : > { %s320_s8 = sld [smem:[%s4488_s12 + %s4490_s9]]  ;;  %s3573_s12 = scalar_lea.hbm %s4429_s4, 8192 }
  0x2f   : > { %s2862_s24 = sshll.u32 %s320_s8, 8 }
  0x30   : > { %s3962_s13 = scalar_lea.hbm %s4429_s4, %s2862_s24 }
  0x31   : > { %s3568_s26 = scalar_lea.hbm %s3962_s13, 4096  ;;  %p3574_p5 = scmp.lt.s32.totalorder %s3962_s13, %s4429_s4 }
  0x32   : > { %p3569_p1 = scmp.ne.s32.totalorder %s3962_s13, %s3568_s26  ;;  %p3575_p6 = scmp.lt.s32.totalorder %s3573_s12, %s3568_s26 }
  0x34   : > { %p3571_p3 = pnand %p3570_p2, %p3569_p1  ;;  %p3576_p8 = por %p3575_p6, %p3574_p5 }
  0x36   : > { %p3572_p4 = pneg %p3571_p3 }
  0x38   : > { %p3577_p11 = pnand %p3576_p8, %p3572_p4 }
  0x3a   : > { %3580 = shalt.err (!%p3577_p11)
}
  0x3b   : > { %s3581_s29 = scalar_lea.vmem %s3941_s15, 4096  ;;  %s3795_s24 = smov [#allocation9]  }
  0x3c   : > { %p3582_p9 = scmp.ne.s32.totalorder %s3941_s15, %s3581_s29  ;;  %s3586_s10 = sshll.u32 %s3795_s24, 4  ;;  %s3587_s10 = int_to_ptr.vmem [resolvable:$false] %s3586_s10 }
  0x3d   : > { %s3588_s9 = scalar_lea.vmem %s3587_s10, 8192  ;;  %p3589_p3 = scmp.lt.s32.totalorder %s3941_s15, %s3587_s10 }
  0x3e   : > { %p3584_p7 = pnand %p3582_p9, %p3570_p2  ;;  %p3590_p0 = scmp.lt.s32.totalorder %s3588_s9, %s3581_s29 }
  0x40   : > { %p3585_p1 = pneg %p3584_p7  ;;  %p3591_p13 = por %p3590_p0, %p3589_p3 }
  0x42   : > { %p3592_p12 = pnand %p3591_p13, %p3585_p1 }
  0x44   : > { %3595 = shalt.err (!%p3592_p12)
}
  0x45   : > { %s3796_s26 = smov 512   ;;  %s3797_s8 = smov 256  }
  0x46   : > { %s3798_s12 = smov 16   ;;  %p4449_p7 = scmp.ne.s32.totalorder %s3776_s18, %s3772_s17 }
  0x47   : > { %3264 = dma.hbm_to_vmem [thread:$0]  (!%p3935_p10), %s3962_s13, 4096, %s3941_s15, %s3966_s25, %s3796_s26, %s3797_s8, %s3798_s12  }
  0x48   : > { %p4450_p9 = scmp.eq.s32.totalorder %s3954_s7, 0  ;;  %p4453_p0 = scmp.ne.s32.totalorder %s3764_s1, %s3760_s0 }
  0x49   : > { %p2679_p4 = scmp.ge.s32.totalorder %s3792_s22, 1  ;;  %p256_p5 = scmp.lt.s32.totalorder %s3792_s22, 3 }
  0x4a   : > { %p3992_p12 = por %p4450_p9, %p4449_p7  ;;  %p4452_p13 = pmov %p4450_p9 }
  0x4b   : > { %p4007_p6 = pnand %p2679_p4, %p256_p5  ;;  %s3799_s11 = smov [#allocation6]  }
  0x4c   : > { %s4451_s14 = scalar_select %p3992_p12, 1, 0 }
  0x4d   : > { %p4001_p2 = por %p4453_p0, %p4452_p13  ;;  %s280_s17 = sshll.u32 %s3799_s11, 4  ;;  %s281_s17 = int_to_ptr.vmem [resolvable:$true] %s280_s17 }
  0x4e   : > { %s4455_s29 = scalar_select %p4007_p6, 1, 0 }
  0x4f   : > { %s4454_s28 = scalar_select %p4001_p2, 1, 0 }
  0x50   : > { %p3252_p10 = pneg %p4007_p6  ;;  %p4456_p8 = pmov %p4450_p9 }
  0x51   : > { %s3800_s0 = smov [#allocation12]   ;;  %s4020_s24 = sld [smem:[#allocation4 + %s4486_s23]] }
  0x52   : > { %p4015_p11 = pnand %p3252_p10, %p4456_p8  ;;  %s293_s13 = sshll.u32 %s3800_s0, 4  ;;  %s294_s13 = int_to_ptr.vmem [resolvable:$true] %s293_s13 }
  0x53   : > { %s3607_s10 = scalar_lea.vmem %s281_s17, 1024  ;;  %p3615_p13 = scmp.lt.s32.totalorder %s281_s17, %s281_s17 }
  0x54   : > { %p3598_p1 = pneg %p4015_p11  ;;  %p3608_p3 = scmp.ne.s32.totalorder %s281_s17, %s3607_s10 }
  0x55   : > { %p3616_p0 = scmp.lt.s32.totalorder %s3607_s10, %s3607_s10 }
  0x56   : > { %p3610_p7 = pnand %p3608_p3, %p3598_p1 }
  0x57   : > { %p3617_p4 = por %p3616_p0, %p3615_p13 }
  0x58   : > { %p3611_p9 = pneg %p3610_p7 }
  0x5a   : > { %p3618_p5 = pnand %p3617_p4, %p3611_p9 }
  0x5c   : > { %3621 = shalt.err (!%p3618_p5)
}
  0x5d   : > { %s4438_s9 = smov 64   ;;  %s4439_s26 = smov 4  }
  0x5e   : > { %s4458_s3 = sld [smem:[#allocation25_spill]]  ;;  %s3633_s11 = scalar_lea.vmem %s294_s13, 1024 }
  0x5f   : > { %p3634_p10 = scmp.ne.s32.totalorder %s294_s13, %s3633_s11  ;;  %p3641_p7 = scmp.lt.s32.totalorder %s294_s13, %s294_s13 }
  0x60   : > { %p3642_p9 = scmp.lt.s32.totalorder %s3633_s11, %s3633_s11 }
  0x61   : > { %p3636_p8 = pnand %p3634_p10, %p3598_p1 }
  0x62   : > { %p3643_p13 = por %p3642_p9, %p3641_p7 }
  0x63   : > { %p3637_p3 = pneg %p3636_p8 }
  0x64   : > { %3255 = dma.hbm_to_vmem [thread:$0]  (!%p4015_p11), %s4458_s3, 1024, %s281_s17, [#allocation7], %s4438_s9, %s4438_s9, %s4439_s26  }
  0x65   : > { %p3644_p0 = pnand %p3643_p13, %p3637_p3 }
  0x67   : > { %3647 = shalt.err (!%p3644_p0)
}
  0x68   : > { %3258 = dma.hbm_to_vmem [thread:$0]  (!%p4015_p11), %s4431_s6, 1024, %s294_s13, [#allocation13], %s4438_s9, %s4438_s9, %s4439_s26  }
  0x69   : > { %p150_p1 = scmp.ne.s32.totalorder %s3768_s16, %s3764_s1  ;;  %s342_s17 = sand.u32 1, %s3768_s16  }
  0x6a   : > { %p4459_p4 = scmp.eq.s32.totalorder %s3792_s22, 0  ;;  %s140_s15 = ssub.s32 %s3925_s27, %s4020_s24 }
  0x6b   : > { %s143_s8 = sadd.s32 1, %s3768_s16  ;;  %p141_p10 = scmp.eq.s32.totalorder %s140_s15, 0 }
  0x6c   : > { %p152_p5 = por %p150_p1, %p4459_p4  ;;  %s2687_s12 = sshll.u32 %s342_s17, 8 }
  0x6d   : > { %s4055_s0 = scalar_select %p141_p10, %s3768_s16, %s143_s8  }
  0x6e   : > { %s3239_s11 = scalar_select %p152_p5, [#allocation4], [#allocation16] }
  0x6f   : > { %s3240_s10 = scalar_select %p152_p5, %s3788_s21, 0 }
  0x70   : > { %p4460_p8 = scmp.lt.s32.totalorder %s3792_s22, 2  ;;  %s344_s9 = scalar_lea.vmem [#allocation11], %s2687_s12 }
  0x71   : > { %s354_s27 = sshll.u32 %s344_s9, 4  ;;  %s3653_s9 = scalar_lea.hbm %s4430_s5, 8192  ;;  %s4068_s27 = int_to_ptr.vmem [resolvable:$true] %s354_s27 }
  0x72   : > { %s4492_s11 = smov (!%p4460_p8, %s3239_s11), [#allocation18]  ;;  %p4461_p3 = pmov %p4460_p8 }
  0x74   : > { %s4494_s10 = smov (!%p4461_p3, %s3240_s10), 0  ;;  %p4462_p7 = pmov %p4461_p3 }
  0x75   : > { %s347_s13 = sld [smem:[%s4492_s11 + %s4494_s10]] }
  0x76   : > { %p4064_p9 = pnand %p4462_p7, %p152_p5 }
  0x78   : > { %p3650_p13 = pneg %p4064_p9 }
  0x7b   : > { %s2863_s24 = sshll.u32 %s347_s13, 12 }
  0x7c   : > { %s4073_s8 = scalar_lea.hbm %s4430_s5, %s2863_s24 }
  0x7d   : > { %s3648_s26 = scalar_lea.hbm %s4073_s8, 4096  ;;  %p3654_p4 = scmp.lt.s32.totalorder %s4073_s8, %s4430_s5 }
  0x7e   : > { %p3649_p11 = scmp.ne.s32.totalorder %s4073_s8, %s3648_s26  ;;  %p3655_p5 = scmp.lt.s32.totalorder %s3653_s9, %s3648_s26 }
  0x80   : > { %p3651_p0 = pnand %p3650_p13, %p3649_p11  ;;  %p3656_p10 = por %p3655_p5, %p3654_p4 }
  0x82   : > { %p3652_p1 = pneg %p3651_p0 }
  0x84   : > { %p3657_p8 = pnand %p3656_p10, %p3652_p1 }
  0x86   : > { %3660 = shalt.err (!%p3657_p8)
}
  0x87   : > { %s3661_s24 = scalar_lea.vmem %s4068_s27, 4096  ;;  %s3803_s17 = smov [#allocation11]  }
  0x88   : > { %p3662_p3 = scmp.ne.s32.totalorder %s4068_s27, %s3661_s24  ;;  %s3666_s15 = sshll.u32 %s3803_s17, 4  ;;  %s3667_s15 = int_to_ptr.vmem [resolvable:$false] %s3666_s15 }
  0x89   : > { %s3668_s11 = scalar_lea.vmem %s3667_s15, 8192  ;;  %p3669_p0 = scmp.lt.s32.totalorder %s4068_s27, %s3667_s15 }
  0x8a   : > { %p3664_p7 = pnand %p3662_p3, %p3650_p13  ;;  %p3670_p2 = scmp.lt.s32.totalorder %s3668_s11, %s3661_s24 }
  0x8c   : > { %p3665_p11 = pneg %p3664_p7  ;;  %p3671_p12 = por %p3670_p2, %p3669_p0 }
  0x8e   : > { %p3672_p6 = pnand %p3671_p12, %p3665_p11 }
  0x90   : > { %3675 = shalt.err (!%p3672_p6)
}
  0x91   : > { %s4464_s26 = smov 4   ;;  %s4465_s12 = smov 64  }
  0x92   : > { %3269 = dma.hbm_to_vmem [thread:$0]  (!%p4064_p9), %s4073_s8, 4096, %s4068_s27, %s3966_s25, %s4465_s12, %s4465_s12, %s4464_s26  }
  0x93   : > { %p4466_p13 = scmp.ne.s32.totalorder %s4455_s29, 0 }
  0x94   : > { %p4467_p1 = scmp.eq.s32.totalorder (!%p4466_p13), %s3954_s7, 0 }
  0x95   : > { %366 = sbr.rel (%p4466_p13) target bundleno = 1228 (0x4cc), region = 48 }
  0x9a   : > { %3739 = dma.done.wait (%p4467_p1), [#allocation7], 1024   ;;  %p4468_p4 = pmov %p4467_p1 }
  0x9b   : > { %s372_s3 = sand.u32 1, %s3954_s7   ;;  %s374_s9 = sand.u32 1, %s3776_s18  }
  0x9c   : > { %3741 = vsyncadd (%p4468_p4), [#allocation7], 4294966272  ;;  %s2692_s10 = sshll.u32 %s374_s9, 8  ;;  %s373_s13 = scalar_lea.sflag [#allocation10], %s372_s3 }
  0x9d   : > { %s4105_s24 = scalar_lea.vmem [#allocation9], %s2692_s10  ;;  %p4469_p12 = scmp.ne.s32.totalorder %s4451_s14, 0 }
  0x9f   : > { %3743 = dma.done.wait (%p4469_p12), %s373_s13, 4096  }
  0xa0   : > { %3745 = vsyncadd (%p4469_p12), %s373_s13, 4294963200  ;;  %s383_s25 = sand.u32 1, %s3764_s1   ;;  %p4470_p2 = scmp.ne.s32.totalorder %s4454_s28, 0 }
  0xa1   : > { %s2693_s29 = sshll.u32 %s383_s25, 8 }
  0xa2   : > { %s4112_s27 = scalar_lea.vmem [#allocation11], %s2693_s29 }
  0xa3   : > { %3747 = dma.done.wait (%p4470_p2), %s373_s13, 4096  }
  0xa4   : > { %3749 = vsyncadd (%p4470_p2), %s373_s13, 4294963200  ;;  %p4471_p6 = pmov %p4467_p1 }
  0xa5   : > { %p4472_p9 = pmov %p4467_p1 }
  0xa6   : > { %3751 = dma.done.wait (%p4471_p6), [#allocation13], 1024  }
  0xa7   : > { %3753 = vsyncadd (%p4472_p9), [#allocation13], 4294966272  ;;  %s4123_s14 = sld [smem:[#allocation4 + %s3784_s20]]  ;;  %p2695_p8 = scmp.ne.s32.totalorder %s3784_s20, 0 }
  0xa8   : > { %s4125_s8 = sld [smem:[#allocation5]] }
  0xaa   : > { %452 = sbr.rel (%p2695_p8) target bundleno = 192 (0xc0), region = 68 }
  0xad   : > { %p448_p5 = scmp.lt.s32.totalorder %s4123_s14, 1 }
  0xae   : > { %p447_p10 = scmp.lt.s32.totalorder %s3784_s20, %s4125_s8 }
  0xaf   : > { %v3804_v0 = vmov 0.0  }
  0xb0   : > { %453 = vst [vmem:[#allocation2 + $0xb0] sm:$0xff] %v3804_v0  ;;  %454 = vst [vmem:[#allocation2] sm:$0xff] %v3804_v0 }
  0xb1   : > { %455 = vst [vmem:[#allocation2 + $0xd8] sm:$0xff] %v3804_v0  ;;  %456 = vst [vmem:[#allocation2 + $0x18] sm:$0xff] %v3804_v0 }
  0xb2   : > { %457 = vst [vmem:[#allocation2 + $0x50] sm:$0xff] %v3804_v0  ;;  %458 = vst [vmem:[#allocation2 + $0x68] sm:$0xff] %v3804_v0 }
  0xb3   : > { %459 = vst [vmem:[#allocation2 + $0x30] sm:$0xff] %v3804_v0  ;;  %460 = vst [vmem:[#allocation2 + $0x48] sm:$0xff] %v3804_v0 }
  0xb4   : > { %461 = vst [vmem:[#allocation2 + $0x80] sm:$0xff] %v3804_v0  ;;  %462 = vst [vmem:[#allocation2 + $0x88] sm:$0xff] %v3804_v0 }
  0xb5   : > { %463 = vst [vmem:[#allocation2 + $0xe8] sm:$0xff] %v3804_v0  ;;  %464 = vst [vmem:[#allocation2 + $0xb8] sm:$0xff] %v3804_v0 }
  0xb6   : > { %465 = vst [vmem:[#allocation2 + $0x60] sm:$0xff] %v3804_v0  ;;  %466 = vst [vmem:[#allocation2 + $0xf0] sm:$0xff] %v3804_v0 }
  0xb7   : > { %467 = vst [vmem:[#allocation2 + $0x8] sm:$0xff] %v3804_v0  ;;  %468 = vst [vmem:[#allocation2 + $0x78] sm:$0xff] %v3804_v0 }
  0xb8   : > { %469 = vst [vmem:[#allocation2 + $0x38] sm:$0xff] %v3804_v0  ;;  %470 = vst [vmem:[#allocation2 + $0x58] sm:$0xff] %v3804_v0 }
  0xb9   : > { %471 = vst [vmem:[#allocation2 + $0x40] sm:$0xff] %v3804_v0  ;;  %472 = vst [vmem:[#allocation2 + $0xc8] sm:$0xff] %v3804_v0 }
  0xba   : > { %473 = vst [vmem:[#allocation2 + $0xe0] sm:$0xff] %v3804_v0  ;;  %474 = vst [vmem:[#allocation2 + $0x90] sm:$0xff] %v3804_v0 }
  0xbb   : > { %475 = vst [vmem:[#allocation2 + $0x70] sm:$0xff] %v3804_v0  ;;  %476 = vst [vmem:[#allocation2 + $0xc0] sm:$0xff] %v3804_v0 }
  0xbc   : > { %477 = vst [vmem:[#allocation2 + $0xa8] sm:$0xff] %v3804_v0  ;;  %478 = vst [vmem:[#allocation2 + $0xd0] sm:$0xff] %v3804_v0 }
  0xbd   : > { %479 = vst [vmem:[#allocation2 + $0x10] sm:$0xff] %v3804_v0  ;;  %480 = vst [vmem:[#allocation2 + $0x28] sm:$0xff] %v3804_v0 }
  0xbe   : > { %481 = vst [vmem:[#allocation2 + $0xa0] sm:$0xff] %v3804_v0  ;;  %482 = vst [vmem:[#allocation2 + $0xf8] sm:$0xff] %v3804_v0 }
  0xbf   : > { %483 = vst [vmem:[#allocation2 + $0x20] sm:$0xff] %v3804_v0  ;;  %484 = vst [vmem:[#allocation2 + $0x98] sm:$0xff] %v3804_v0 }
  0xc0 PF: > { %p485_p3 = pnand %p448_p5, %p447_p10 }
  0xc2   : > { %488 = sbr.rel (%p485_p3) target bundleno = 496 (0x1f0), region = 72 }
  0xc7   : > { %v3362_v1 = vld [vmem:[%s4112_s27 + $0x78] sm:$0xff]   ;;  %v3366_v5 = vld [vmem:[%s4112_s27 + $0x70] sm:$0xff]   ;;  %v3370_v9 = vld [vmem:[%s4112_s27 + $0x68] sm:$0xff]  }
  0xc8   : > { %v3363_v2 = vld [vmem:[%s4112_s27 + $0xf8] sm:$0xff]   ;;  %2864 = vmatprep.subr.bf16.mxu0 %v3362_v1  ;;  %v3367_v6 = vld [vmem:[%s4112_s27 + $0xf0] sm:$0xff]   ;;  %v3371_v10 = vld [vmem:[%s4112_s27 + $0xe8] sm:$0xff]  }
  0xc9   : > { %v3364_v3 = vld [vmem:[%s4112_s27 + $0x38] sm:$0xff]   ;;  %2928 = vmatprep.subr.bf16.mxu1 %v3363_v2  ;;  %v3368_v7 = vld [vmem:[%s4112_s27 + $0x30] sm:$0xff]   ;;  %v3372_v11 = vld [vmem:[%s4112_s27 + $0x28] sm:$0xff]  }
  0xca   : > { %v3365_v4 = vld [vmem:[%s4112_s27 + $0xb8] sm:$0xff]   ;;  %2865 = vmatpush3.bf16.msra.mxu0 %v3364_v3  ;;  %v3369_v8 = vld [vmem:[%s4112_s27 + $0xb0] sm:$0xff]   ;;  %v3373_v12 = vld [vmem:[%s4112_s27 + $0xa8] sm:$0xff]  }
  0xcb   : > { %2929 = vmatpush3.bf16.msra.mxu1 %v3365_v4  ;;  %2866 = vmatprep.subr.bf16.mxu0 %v3366_v5  ;;  %v3374_v13 = vld [vmem:[%s4112_s27 + $0x60] sm:$0xff]   ;;  %v3378_v17 = vld [vmem:[%s4112_s27 + $0x58] sm:$0xff]   ;;  %v3382_v21 = vld [vmem:[%s4112_s27 + $0x50] sm:$0xff]  }
  0xcc   : > { %2930 = vmatprep.subr.bf16.mxu1 %v3367_v6  ;;  %v3375_v14 = vld [vmem:[%s4112_s27 + $0xe0] sm:$0xff]   ;;  %v3379_v18 = vld [vmem:[%s4112_s27 + $0xd8] sm:$0xff]   ;;  %v3383_v22 = vld [vmem:[%s4112_s27 + $0xd0] sm:$0xff]  }
  0xcd   : > { %v3376_v15 = vld [vmem:[%s4112_s27 + $0x20] sm:$0xff]   ;;  %v3380_v19 = vld [vmem:[%s4112_s27 + $0x18] sm:$0xff]   ;;  %v3384_v23 = vld [vmem:[%s4112_s27 + $0x10] sm:$0xff]  }
  0xce   : > { %2867 = vmatpush3.bf16.msra.mxu0 %v3368_v7  ;;  %v3377_v16 = vld [vmem:[%s4112_s27 + $0xa0] sm:$0xff]   ;;  %v3381_v20 = vld [vmem:[%s4112_s27 + $0x98] sm:$0xff]   ;;  %v3385_v24 = vld [vmem:[%s4112_s27 + $0x90] sm:$0xff]  }
  0xcf   : > { %2931 = vmatpush3.bf16.msra.mxu1 %v3369_v8  ;;  %2868 = vmatprep.subr.bf16.mxu0 %v3370_v9  ;;  %v3386_v25 = vld [vmem:[%s4112_s27 + $0x48] sm:$0xff]   ;;  %v3390_v29 = vld [vmem:[%s4112_s27 + $0x40] sm:$0xff]   ;;  %v489_v8 = vld [vmem:[#allocation2 + $0xb0] sm:$0xff] }
  0xd0   : > { %2932 = vmatprep.subr.bf16.mxu1 %v3371_v10  ;;  %v3387_v26 = vld [vmem:[%s4112_s27 + $0xc8] sm:$0xff]   ;;  %v3391_v30 = vld [vmem:[%s4112_s27 + $0xc0] sm:$0xff]  }
  0xd1   : > { %v3388_v27 = vld [vmem:[%s4112_s27 + $0x8] sm:$0xff]   ;;  %v3392_v31 = vld [vmem:[%s4112_s27] sm:$0xff]  }
  0xd2   : > { %2869 = vmatpush3.bf16.msra.mxu0 %v3372_v11  ;;  %v3389_v28 = vld [vmem:[%s4112_s27 + $0x88] sm:$0xff]   ;;  %v3393_v32 = vld [vmem:[%s4112_s27 + $0x80] sm:$0xff]  }
  0xd3   : > { %2933 = vmatpush3.bf16.msra.mxu1 %v3373_v12  ;;  %2870 = vmatprep.subr.bf16.mxu0 %v3374_v13  ;;  %v3394_v33 = vld [vmem:[%s4105_s24] ss:$16 sps:$4 sm:$0xff]   ;;  %v3396_v34 = vld [vmem:[%s4105_s24 + $0x4] ss:$16 sps:$4 sm:$0xff]   ;;  %v3397_v35 = vld [vmem:[%s4105_s24 + $0x8] ss:$16 sps:$4 sm:$0xff]  }
  0xd4   : > { %2934 = vmatprep.subr.bf16.mxu1 %v3375_v14  ;;  %v3399_v36 = vld [vmem:[%s4105_s24 + $0xc] ss:$16 sps:$4 sm:$0xff]   ;;  %985 = vmatprep.mubr.bf16.mxu0 %v3396_v34  ;;  %v3400_v37 = vld [vmem:[%s4105_s24 + $0x24] ss:$16 sps:$4 sm:$0xff]   ;;  %v3404_v39 = vld [vmem:[%s4105_s24 + $0x20] ss:$16 sps:$4 sm:$0xff]  }
  0xd5   : > { %1082 = vmatprep.mubr.bf16.mxu1 %v3399_v36  ;;  %v3402_v38 = vld [vmem:[%s4105_s24 + $0x2c] ss:$16 sps:$4 sm:$0xff]   ;;  %v3405_v40 = vld [vmem:[%s4105_s24 + $0x28] ss:$16 sps:$4 sm:$0xff]   ;;  %v3406_v41 = vld [vmem:[%s4105_s24 + $0x44] ss:$16 sps:$4 sm:$0xff]  }
  0xd6   : > { %2871 = vmatpush3.bf16.msra.mxu0 %v3376_v15  ;;  %v3408_v42 = vld [vmem:[%s4105_s24 + $0x4c] ss:$16 sps:$4 sm:$0xff]   ;;  %v3410_v43 = vld [vmem:[%s4105_s24 + $0x40] ss:$16 sps:$4 sm:$0xff]   ;;  %v3411_v44 = vld [vmem:[%s4105_s24 + $0x48] ss:$16 sps:$4 sm:$0xff]  }
  0xd7   : > { %2935 = vmatpush3.bf16.msra.mxu1 %v3377_v16  ;;  %2872 = vmatprep.subr.bf16.mxu0 %v3378_v17  ;;  %v3412_v45 = vld [vmem:[%s4105_s24 + $0x64] ss:$16 sps:$4 sm:$0xff]   ;;  %v3414_v46 = vld [vmem:[%s4105_s24 + $0x6c] ss:$16 sps:$4 sm:$0xff]   ;;  %v3416_v47 = vld [vmem:[%s4105_s24 + $0x60] ss:$16 sps:$4 sm:$0xff]  }
  0xd8   : > { %2936 = vmatprep.subr.bf16.mxu1 %v3379_v18  ;;  %v3417_v48 = vld [vmem:[%s4105_s24 + $0x68] ss:$16 sps:$4 sm:$0xff]   ;;  %v3418_v49 = vld [vmem:[%s4105_s24 + $0x84] ss:$16 sps:$4 sm:$0xff]   ;;  %v3420_v50 = vld [vmem:[%s4105_s24 + $0x8c] ss:$16 sps:$4 sm:$0xff]  }
  0xd9   : > { %v3422_v51 = vld [vmem:[%s4105_s24 + $0x80] ss:$16 sps:$4 sm:$0xff]   ;;  %v3423_v52 = vld [vmem:[%s4105_s24 + $0x88] ss:$16 sps:$4 sm:$0xff]   ;;  %v3424_v53 = vld [vmem:[%s4105_s24 + $0xa4] ss:$16 sps:$4 sm:$0xff]  }
  0xda   : > { %2873 = vmatpush3.bf16.msra.mxu0 %v3380_v19  ;;  %v3426_v54 = vld [vmem:[%s4105_s24 + $0xac] ss:$16 sps:$4 sm:$0xff]   ;;  %v3428_v55 = vld [vmem:[%s4105_s24 + $0xa0] ss:$16 sps:$4 sm:$0xff]   ;;  %v3429_v56 = vld [vmem:[%s4105_s24 + $0xa8] ss:$16 sps:$4 sm:$0xff]  }
  0xdb   : > { %2937 = vmatpush3.bf16.msra.mxu1 %v3381_v20  ;;  %2874 = vmatprep.subr.bf16.mxu0 %v3382_v21  ;;  %v3430_v57 = vld [vmem:[%s4105_s24 + $0xc4] ss:$16 sps:$4 sm:$0xff]   ;;  %v3432_v58 = vld [vmem:[%s4105_s24 + $0xcc] ss:$16 sps:$4 sm:$0xff]   ;;  %v3434_v59 = vld [vmem:[%s4105_s24 + $0xc0] ss:$16 sps:$4 sm:$0xff]  }
  0xdc   : > { %2938 = vmatprep.subr.bf16.mxu1 %v3383_v22  ;;  %v3435_v60 = vld [vmem:[%s4105_s24 + $0xc8] ss:$16 sps:$4 sm:$0xff]   ;;  %v3436_v61 = vld [vmem:[%s4105_s24 + $0xe4] ss:$16 sps:$4 sm:$0xff]   ;;  %v3438_v62 = vld [vmem:[%s4105_s24 + $0xec] ss:$16 sps:$4 sm:$0xff]  }
  0xdd   : > { %v3440_v63 = vld [vmem:[%s4105_s24 + $0xe0] ss:$16 sps:$4 sm:$0xff]   ;;  %v3441_v0 = vld [vmem:[%s4105_s24 + $0xe8] ss:$16 sps:$4 sm:$0xff]  }
  0xde   : > { %2875 = vmatpush3.bf16.msra.mxu0 %v3384_v23  ;;  %v490_v17 = vld [vmem:[#allocation2 + $0xd8] sm:$0xff] }
  0xdf   : > { %2939 = vmatpush3.bf16.msra.mxu1 %v3385_v24  ;;  %2876 = vmatprep.subr.bf16.mxu0 %v3386_v25 }
  0xe0   : > { %2940 = vmatprep.subr.bf16.mxu1 %v3387_v26  ;;  %v491_v26 = vld [vmem:[#allocation2 + $0x50] sm:$0xff] }
  0xe2   : > { %2877 = vmatpush3.bf16.msra.mxu0 %v3388_v27 }
  0xe3   : > { %2941 = vmatpush3.bf16.msra.mxu1 %v3389_v28  ;;  %2878 = vmatprep.subr.bf16.mxu0 %v3390_v29 }
  0xe4   : > { %2942 = vmatprep.subr.bf16.mxu1 %v3391_v30 }
  0xe6   : > { %2879 = vmatpush3.bf16.msra.mxu0 %v3392_v31 }
  0xe7   : > { %2943 = vmatpush3.bf16.msra.mxu1 %v3393_v32 }
  0xe9   : > { %986 = vmatmul.mubr.bf16.vlgmr.msra.gmra.mxu0 %v3394_v33 }
  0xea   : > { %1083 = vmatmul.mubr.bf16.vlgmr.msra.gmra.mxu1 %v3397_v35  ;;  %993 = vmatprep.mubr.bf16.mxu0 %v3400_v37  ;;  %v492_v35 = vld [vmem:[#allocation2 + $0x30] sm:$0xff] }
  0xeb   : > { %1090 = vmatprep.mubr.bf16.mxu1 %v3402_v38 }
  0xf1   : > { %994 = vmatmul.mubr.bf16.gmra.mxu0 %v3404_v39 }
  0xf2   : > { %1091 = vmatmul.mubr.bf16.gmra.mxu1 %v3405_v40  ;;  %1001 = vmatprep.mubr.bf16.mxu0 %v3406_v41 }
  0xf3   : > { %1098 = vmatprep.mubr.bf16.mxu1 %v3408_v42 }
  0xf9   : > { %1002 = vmatmul.mubr.bf16.gmra.mxu0 %v3410_v43 }
  0xfa   : > { %1099 = vmatmul.mubr.bf16.gmra.mxu1 %v3411_v44  ;;  %1009 = vmatprep.mubr.bf16.mxu0 %v3412_v45  ;;  %v493_v44 = vld [vmem:[#allocation2 + $0x80] sm:$0xff] }
  0xfb   : > { %1106 = vmatprep.mubr.bf16.mxu1 %v3414_v46 }
 0x101   : > { %1010 = vmatmul.mubr.bf16.gmra.mxu0 %v3416_v47 }
 0x102   : > { %1107 = vmatmul.mubr.bf16.gmra.mxu1 %v3417_v48  ;;  %1017 = vmatprep.mubr.bf16.mxu0 %v3418_v49 }
 0x103   : > { %1114 = vmatprep.mubr.bf16.mxu1 %v3420_v50 }
 0x109   : > { %1018 = vmatmul.mubr.bf16.gmra.mxu0 %v3422_v51 }
 0x10a   : > { %1115 = vmatmul.mubr.bf16.gmra.mxu1 %v3423_v52  ;;  %1025 = vmatprep.mubr.bf16.mxu0 %v3424_v53  ;;  %v494_v53 = vld [vmem:[#allocation2 + $0xe8] sm:$0xff] }
 0x10b   : > { %1122 = vmatprep.mubr.bf16.mxu1 %v3426_v54 }
 0x111   : > { %1026 = vmatmul.mubr.bf16.gmra.mxu0 %v3428_v55 }
 0x112   : > { %1123 = vmatmul.mubr.bf16.gmra.mxu1 %v3429_v56  ;;  %1033 = vmatprep.mubr.bf16.mxu0 %v3430_v57 }
 0x113   : > { %1130 = vmatprep.mubr.bf16.mxu1 %v3432_v58 }
 0x119   : > { %1034 = vmatmul.mubr.bf16.gmra.mxu0 %v3434_v59 }
 0x11a   : > { %1131 = vmatmul.mubr.bf16.gmra.mxu1 %v3435_v60  ;;  %1041 = vmatprep.mubr.bf16.mxu0 %v3436_v61 }
 0x11b   : > { %1138 = vmatprep.mubr.bf16.mxu1 %v3438_v62  ;;  %v495_v62 = vld [vmem:[#allocation2 + $0x60] sm:$0xff] }
 0x121   : > { %1042 = vmatmul.mubr.bf16.gmra.mxu0 %v3440_v63 }
 0x122   : > { %1139 = vmatmul.mubr.bf16.gmra.mxu1 %v3441_v0 }
 0x1a9   : > { %v2880_v1 = vpop.f32.mrf.mxu0 }
 0x1aa   : > { %v2944_v2 = vpop.f32.mrf.mxu1 }
 0x1ab   : > { %v2881_v3 = vpop.f32.mrf.mxu0 }
 0x1ac   : > { %v2882_v4 = vadd.f32 %v2881_v3, %v2880_v1  ;;  %v2945_v5 = vpop.f32.mrf.mxu1 }
 0x1ad   : > { %v2946_v6 = vadd.f32 %v2945_v5, %v2944_v2  ;;  %v2883_v7 = vpop.f32.mrf.mxu0 }
 0x1ae   : > { %v2947_v9 = vpop.f32.mrf.mxu1 }
 0x1af   : > { %v1085_v10 = vadd.f32 %v2946_v6, %v2882_v4  ;;  %v2884_v11 = vpop.f32.mrf.mxu0 }
 0x1b0   : > { %v2885_v12 = vadd.f32 %v2884_v11, %v2883_v7  ;;  %v2948_v13 = vpop.f32.mrf.mxu1  ;;  %v496_v7 = vld [vmem:[#allocation2 + $0x8] sm:$0xff] }
 0x1b1   : > { %v1147_v14 = vadd.f32 %v1085_v10, %v489_v8  ;;  %v2949_v15 = vadd.f32 %v2948_v13, %v2947_v9  ;;  %v2886_v16 = vpop.f32.mrf.mxu0 }
 0x1b2   : > { %v2950_v18 = vpop.f32.mrf.mxu1 }
 0x1b3   : > { %1163 = vst [vmem:[#allocation2 + $0xb0] sm:$0xff] %v1147_v14  ;;  %v1088_v19 = vadd.f32 %v2949_v15, %v2885_v12  ;;  %v2887_v20 = vpop.f32.mrf.mxu0 }
 0x1b4   : > { %v2888_v21 = vadd.f32 %v2887_v20, %v2886_v16  ;;  %v2951_v22 = vpop.f32.mrf.mxu1  ;;  %v497_v16 = vld [vmem:[#allocation2 + $0x38] sm:$0xff] }
 0x1b5   : > { %v1148_v23 = vadd.f32 %v1088_v19, %v490_v17  ;;  %v2952_v24 = vadd.f32 %v2951_v22, %v2950_v18  ;;  %v2889_v25 = vpop.f32.mrf.mxu0 }
 0x1b6   : > { %v2953_v27 = vpop.f32.mrf.mxu1 }
 0x1b7   : > { %1164 = vst [vmem:[#allocation2 + $0xd8] sm:$0xff] %v1148_v23  ;;  %v1093_v28 = vadd.f32 %v2952_v24, %v2888_v21  ;;  %v2890_v29 = vpop.f32.mrf.mxu0 }
 0x1b8   : > { %v2891_v30 = vadd.f32 %v2890_v29, %v2889_v25  ;;  %v2954_v31 = vpop.f32.mrf.mxu1  ;;  %v498_v25 = vld [vmem:[#allocation2 + $0x40] sm:$0xff] }
 0x1b9   : > { %v1149_v32 = vadd.f32 %v1093_v28, %v491_v26  ;;  %v2955_v33 = vadd.f32 %v2954_v31, %v2953_v27  ;;  %v2892_v34 = vpop.f32.mrf.mxu0 }
 0x1ba   : > { %v2956_v36 = vpop.f32.mrf.mxu1 }
 0x1bb   : > { %1165 = vst [vmem:[#allocation2 + $0x50] sm:$0xff] %v1149_v32  ;;  %v1096_v37 = vadd.f32 %v2955_v33, %v2891_v30  ;;  %v2893_v38 = vpop.f32.mrf.mxu0 }
 0x1bc   : > { %v2894_v39 = vadd.f32 %v2893_v38, %v2892_v34  ;;  %v2957_v40 = vpop.f32.mrf.mxu1  ;;  %v499_v34 = vld [vmem:[#allocation2 + $0xe0] sm:$0xff] }
 0x1bd   : > { %v1150_v41 = vadd.f32 %v1096_v37, %v492_v35  ;;  %v2958_v42 = vadd.f32 %v2957_v40, %v2956_v36  ;;  %v2895_v43 = vpop.f32.mrf.mxu0 }
 0x1be   : > { %v2959_v45 = vpop.f32.mrf.mxu1 }
 0x1bf   : > { %1166 = vst [vmem:[#allocation2 + $0x30] sm:$0xff] %v1150_v41  ;;  %v1101_v46 = vadd.f32 %v2958_v42, %v2894_v39  ;;  %v2896_v47 = vpop.f32.mrf.mxu0 }
 0x1c0   : > { %v2897_v48 = vadd.f32 %v2896_v47, %v2895_v43  ;;  %v2960_v49 = vpop.f32.mrf.mxu1  ;;  %v500_v43 = vld [vmem:[#allocation2 + $0x70] sm:$0xff] }
 0x1c1   : > { %v1151_v50 = vadd.f32 %v1101_v46, %v493_v44  ;;  %v2961_v51 = vadd.f32 %v2960_v49, %v2959_v45  ;;  %v2898_v52 = vpop.f32.mrf.mxu0 }
 0x1c2   : > { %v2962_v54 = vpop.f32.mrf.mxu1 }
 0x1c3   : > { %1167 = vst [vmem:[#allocation2 + $0x80] sm:$0xff] %v1151_v50  ;;  %v1104_v55 = vadd.f32 %v2961_v51, %v2897_v48  ;;  %v2899_v56 = vpop.f32.mrf.mxu0 }
 0x1c4   : > { %v2900_v57 = vadd.f32 %v2899_v56, %v2898_v52  ;;  %v2963_v58 = vpop.f32.mrf.mxu1  ;;  %v501_v52 = vld [vmem:[#allocation2 + $0xa8] sm:$0xff] }
 0x1c5   : > { %v1152_v59 = vadd.f32 %v1104_v55, %v494_v53  ;;  %v2964_v60 = vadd.f32 %v2963_v58, %v2962_v54  ;;  %v2901_v61 = vpop.f32.mrf.mxu0 }
 0x1c6   : > { %v2965_v63 = vpop.f32.mrf.mxu1 }
 0x1c7   : > { %1168 = vst [vmem:[#allocation2 + $0xe8] sm:$0xff] %v1152_v59  ;;  %v1109_v0 = vadd.f32 %v2964_v60, %v2900_v57  ;;  %v2902_v1 = vpop.f32.mrf.mxu0 }
 0x1c8   : > { %v2903_v2 = vadd.f32 %v2902_v1, %v2901_v61  ;;  %v2966_v3 = vpop.f32.mrf.mxu1  ;;  %v502_v61 = vld [vmem:[#allocation2 + $0x10] sm:$0xff] }
 0x1c9   : > { %v1153_v4 = vadd.f32 %v1109_v0, %v495_v62  ;;  %v2967_v5 = vadd.f32 %v2966_v3, %v2965_v63  ;;  %v2904_v6 = vpop.f32.mrf.mxu0 }
 0x1ca   : > { %v2968_v8 = vpop.f32.mrf.mxu1 }
 0x1cb   : > { %1169 = vst [vmem:[#allocation2 + $0x60] sm:$0xff] %v1153_v4  ;;  %v1112_v9 = vadd.f32 %v2967_v5, %v2903_v2  ;;  %v2905_v10 = vpop.f32.mrf.mxu0 }
 0x1cc   : > { %v2906_v11 = vadd.f32 %v2905_v10, %v2904_v6  ;;  %v2969_v12 = vpop.f32.mrf.mxu1  ;;  %v503_v6 = vld [vmem:[#allocation2 + $0xa0] sm:$0xff] }
 0x1cd   : > { %v1154_v13 = vadd.f32 %v1112_v9, %v496_v7  ;;  %v2970_v14 = vadd.f32 %v2969_v12, %v2968_v8  ;;  %v2907_v15 = vpop.f32.mrf.mxu0 }
 0x1ce   : > { %v2971_v17 = vpop.f32.mrf.mxu1 }
 0x1cf   : > { %1170 = vst [vmem:[#allocation2 + $0x8] sm:$0xff] %v1154_v13  ;;  %v1117_v18 = vadd.f32 %v2970_v14, %v2906_v11  ;;  %v2908_v19 = vpop.f32.mrf.mxu0  ;;  %v504_v14 = vld [vmem:[#allocation2 + $0x20] sm:$0xff] }
 0x1d0   : > { %v2909_v20 = vadd.f32 %v2908_v19, %v2907_v15  ;;  %v2972_v21 = vpop.f32.mrf.mxu1 }
 0x1d1   : > { %v1155_v22 = vadd.f32 %v1117_v18, %v497_v16  ;;  %v2973_v23 = vadd.f32 %v2972_v21, %v2971_v17  ;;  %v2910_v24 = vpop.f32.mrf.mxu0 }
 0x1d2   : > { %v2974_v26 = vpop.f32.mrf.mxu1 }
 0x1d3   : > { %1171 = vst [vmem:[#allocation2 + $0x38] sm:$0xff] %v1155_v22  ;;  %v1120_v27 = vadd.f32 %v2973_v23, %v2909_v20  ;;  %v2911_v28 = vpop.f32.mrf.mxu0 }
 0x1d4   : > { %v2912_v29 = vadd.f32 %v2911_v28, %v2910_v24  ;;  %v2975_v30 = vpop.f32.mrf.mxu1 }
 0x1d5   : > { %v1156_v31 = vadd.f32 %v1120_v27, %v498_v25  ;;  %v2976_v32 = vadd.f32 %v2975_v30, %v2974_v26  ;;  %v2913_v33 = vpop.f32.mrf.mxu0 }
 0x1d6   : > { %v2977_v35 = vpop.f32.mrf.mxu1 }
 0x1d7   : > { %1172 = vst [vmem:[#allocation2 + $0x40] sm:$0xff] %v1156_v31  ;;  %v1125_v36 = vadd.f32 %v2976_v32, %v2912_v29  ;;  %v2914_v37 = vpop.f32.mrf.mxu0 }
 0x1d8   : > { %v2915_v38 = vadd.f32 %v2914_v37, %v2913_v33  ;;  %v2978_v39 = vpop.f32.mrf.mxu1 }
 0x1d9   : > { %v1157_v40 = vadd.f32 %v1125_v36, %v499_v34  ;;  %v2979_v41 = vadd.f32 %v2978_v39, %v2977_v35  ;;  %v2916_v42 = vpop.f32.mrf.mxu0 }
 0x1da   : > { %v2980_v44 = vpop.f32.mrf.mxu1 }
 0x1db   : > { %1173 = vst [vmem:[#allocation2 + $0xe0] sm:$0xff] %v1157_v40  ;;  %v1128_v45 = vadd.f32 %v2979_v41, %v2915_v38  ;;  %v2917_v46 = vpop.f32.mrf.mxu0 }
 0x1dc   : > { %v2918_v47 = vadd.f32 %v2917_v46, %v2916_v42  ;;  %v2981_v48 = vpop.f32.mrf.mxu1 }
 0x1dd   : > { %v1158_v49 = vadd.f32 %v1128_v45, %v500_v43  ;;  %v2982_v50 = vadd.f32 %v2981_v48, %v2980_v44  ;;  %v2919_v51 = vpop.f32.mrf.mxu0 }
 0x1de   : > { %v2983_v53 = vpop.f32.mrf.mxu1 }
 0x1df   : > { %1174 = vst [vmem:[#allocation2 + $0x70] sm:$0xff] %v1158_v49  ;;  %v1133_v54 = vadd.f32 %v2982_v50, %v2918_v47  ;;  %v2920_v55 = vpop.f32.mrf.mxu0 }
 0x1e0   : > { %v2921_v56 = vadd.f32 %v2920_v55, %v2919_v51  ;;  %v2984_v57 = vpop.f32.mrf.mxu1 }
 0x1e1   : > { %v1159_v58 = vadd.f32 %v1133_v54, %v501_v52  ;;  %v2985_v59 = vadd.f32 %v2984_v57, %v2983_v53  ;;  %v2922_v60 = vpop.f32.mrf.mxu0 }
 0x1e2   : > { %v2986_v62 = vpop.f32.mrf.mxu1 }
 0x1e3   : > { %1175 = vst [vmem:[#allocation2 + $0xa8] sm:$0xff] %v1159_v58  ;;  %v1136_v63 = vadd.f32 %v2985_v59, %v2921_v56  ;;  %v2923_v0 = vpop.f32.mrf.mxu0 }
 0x1e4   : > { %v2924_v1 = vadd.f32 %v2923_v0, %v2922_v60  ;;  %v2987_v2 = vpop.f32.mrf.mxu1 }
 0x1e5   : > { %v1160_v3 = vadd.f32 %v1136_v63, %v502_v61  ;;  %v2988_v4 = vadd.f32 %v2987_v2, %v2986_v62  ;;  %v2925_v5 = vpop.f32.mrf.mxu0 }
 0x1e6   : > { %v2989_v7 = vpop.f32.mrf.mxu1 }
 0x1e7   : > { %1176 = vst [vmem:[#allocation2 + $0x10] sm:$0xff] %v1160_v3  ;;  %v1141_v8 = vadd.f32 %v2988_v4, %v2924_v1  ;;  %v2926_v9 = vpop.f32.mrf.mxu0 }
 0x1e8   : > { %v2927_v10 = vadd.f32 %v2926_v9, %v2925_v5  ;;  %v2990_v11 = vpop.f32.mrf.mxu1 }
 0x1e9   : > { %v1161_v12 = vadd.f32 %v1141_v8, %v503_v6  ;;  %v2991_v13 = vadd.f32 %v2990_v11, %v2989_v7 }
 0x1eb   : > { %1177 = vst [vmem:[#allocation2 + $0xa0] sm:$0xff] %v1161_v12  ;;  %v1144_v15 = vadd.f32 %v2991_v13, %v2927_v10 }
 0x1ed   : > { %v1162_v16 = vadd.f32 %v1144_v15, %v504_v14 }
 0x1ef   : > { %1178 = vst [vmem:[#allocation2 + $0x20] sm:$0xff] %v1162_v16 }
 0x1f0 PF: > { %p1179_p7 = scmp.ge.s32.totalorder %s4123_s14, 1 }
 0x1f2   : > { %p1180_p11 = pnand %p1179_p7, %p447_p10 }
 0x1f4   : > { %1183 = sbr.rel (%p1180_p11) target bundleno = 802 (0x322), region = 76 }
 0x1f9   : > { %v3442_v17 = vld [vmem:[%s4112_s27 + $0x78] sm:$0xff]   ;;  %v3446_v21 = vld [vmem:[%s4112_s27 + $0x70] sm:$0xff]   ;;  %v3450_v25 = vld [vmem:[%s4112_s27 + $0x68] sm:$0xff]  }
 0x1fa   : > { %v3443_v18 = vld [vmem:[%s4112_s27 + $0xf8] sm:$0xff]   ;;  %2992 = vmatprep.subr.bf16.mxu0 %v3442_v17  ;;  %v3447_v22 = vld [vmem:[%s4112_s27 + $0xf0] sm:$0xff]   ;;  %v3451_v26 = vld [vmem:[%s4112_s27 + $0xe8] sm:$0xff]  }
 0x1fb   : > { %v3444_v19 = vld [vmem:[%s4112_s27 + $0x38] sm:$0xff]   ;;  %3056 = vmatprep.subr.bf16.mxu1 %v3443_v18  ;;  %v3448_v23 = vld [vmem:[%s4112_s27 + $0x30] sm:$0xff]   ;;  %v3452_v27 = vld [vmem:[%s4112_s27 + $0x28] sm:$0xff]  }
 0x1fc   : > { %v3445_v20 = vld [vmem:[%s4112_s27 + $0xb8] sm:$0xff]   ;;  %2993 = vmatpush3.bf16.msra.mxu0 %v3444_v19  ;;  %v3449_v24 = vld [vmem:[%s4112_s27 + $0xb0] sm:$0xff]   ;;  %v3453_v28 = vld [vmem:[%s4112_s27 + $0xa8] sm:$0xff]  }
 0x1fd   : > { %3057 = vmatpush3.bf16.msra.mxu1 %v3445_v20  ;;  %2994 = vmatprep.subr.bf16.mxu0 %v3446_v21  ;;  %v3454_v29 = vld [vmem:[%s4112_s27 + $0x60] sm:$0xff]   ;;  %v3458_v33 = vld [vmem:[%s4112_s27 + $0x58] sm:$0xff]   ;;  %v3462_v37 = vld [vmem:[%s4112_s27 + $0x50] sm:$0xff]  }
 0x1fe   : > { %3058 = vmatprep.subr.bf16.mxu1 %v3447_v22  ;;  %v3455_v30 = vld [vmem:[%s4112_s27 + $0xe0] sm:$0xff]   ;;  %v3459_v34 = vld [vmem:[%s4112_s27 + $0xd8] sm:$0xff]   ;;  %v3463_v38 = vld [vmem:[%s4112_s27 + $0xd0] sm:$0xff]  }
 0x1ff   : > { %v3456_v31 = vld [vmem:[%s4112_s27 + $0x20] sm:$0xff]   ;;  %v3460_v35 = vld [vmem:[%s4112_s27 + $0x18] sm:$0xff]   ;;  %v3464_v39 = vld [vmem:[%s4112_s27 + $0x10] sm:$0xff]  }
 0x200   : > { %2995 = vmatpush3.bf16.msra.mxu0 %v3448_v23  ;;  %v3457_v32 = vld [vmem:[%s4112_s27 + $0xa0] sm:$0xff]   ;;  %v3461_v36 = vld [vmem:[%s4112_s27 + $0x98] sm:$0xff]   ;;  %v3465_v40 = vld [vmem:[%s4112_s27 + $0x90] sm:$0xff]  }
 0x201   : > { %3059 = vmatpush3.bf16.msra.mxu1 %v3449_v24  ;;  %2996 = vmatprep.subr.bf16.mxu0 %v3450_v25  ;;  %v3466_v41 = vld [vmem:[%s4112_s27 + $0x48] sm:$0xff]   ;;  %v3470_v45 = vld [vmem:[%s4112_s27 + $0x40] sm:$0xff]  }
 0x202   : > { %3060 = vmatprep.subr.bf16.mxu1 %v3451_v26  ;;  %v3467_v42 = vld [vmem:[%s4112_s27 + $0xc8] sm:$0xff]   ;;  %v3471_v46 = vld [vmem:[%s4112_s27 + $0xc0] sm:$0xff]  }
 0x203   : > { %v3468_v43 = vld [vmem:[%s4112_s27 + $0x8] sm:$0xff]   ;;  %v3472_v47 = vld [vmem:[%s4112_s27] sm:$0xff]  }
 0x204   : > { %2997 = vmatpush3.bf16.msra.mxu0 %v3452_v27  ;;  %v3469_v44 = vld [vmem:[%s4112_s27 + $0x88] sm:$0xff]   ;;  %v3473_v48 = vld [vmem:[%s4112_s27 + $0x80] sm:$0xff]  }
 0x205   : > { %3061 = vmatpush3.bf16.msra.mxu1 %v3453_v28  ;;  %2998 = vmatprep.subr.bf16.mxu0 %v3454_v29  ;;  %v3474_v49 = vld [vmem:[%s4105_s24] ss:$16 sps:$4 sm:$0xff]   ;;  %v3476_v50 = vld [vmem:[%s4105_s24 + $0x4] ss:$16 sps:$4 sm:$0xff]   ;;  %v3477_v51 = vld [vmem:[%s4105_s24 + $0x8] ss:$16 sps:$4 sm:$0xff]  }
 0x206   : > { %3062 = vmatprep.subr.bf16.mxu1 %v3455_v30  ;;  %v3479_v52 = vld [vmem:[%s4105_s24 + $0xc] ss:$16 sps:$4 sm:$0xff]   ;;  %1680 = vmatprep.mubr.bf16.mxu0 %v3476_v50  ;;  %v3480_v53 = vld [vmem:[%s4105_s24 + $0x24] ss:$16 sps:$4 sm:$0xff]   ;;  %v3484_v55 = vld [vmem:[%s4105_s24 + $0x20] ss:$16 sps:$4 sm:$0xff]  }
 0x207   : > { %1777 = vmatprep.mubr.bf16.mxu1 %v3479_v52  ;;  %v3482_v54 = vld [vmem:[%s4105_s24 + $0x2c] ss:$16 sps:$4 sm:$0xff]   ;;  %v3485_v56 = vld [vmem:[%s4105_s24 + $0x28] ss:$16 sps:$4 sm:$0xff]   ;;  %v3486_v57 = vld [vmem:[%s4105_s24 + $0x44] ss:$16 sps:$4 sm:$0xff]  }
 0x208   : > { %2999 = vmatpush3.bf16.msra.mxu0 %v3456_v31  ;;  %v3488_v58 = vld [vmem:[%s4105_s24 + $0x4c] ss:$16 sps:$4 sm:$0xff]   ;;  %v3490_v59 = vld [vmem:[%s4105_s24 + $0x40] ss:$16 sps:$4 sm:$0xff]   ;;  %v3491_v60 = vld [vmem:[%s4105_s24 + $0x48] ss:$16 sps:$4 sm:$0xff]  }
 0x209   : > { %3063 = vmatpush3.bf16.msra.mxu1 %v3457_v32  ;;  %3000 = vmatprep.subr.bf16.mxu0 %v3458_v33  ;;  %v3492_v61 = vld [vmem:[%s4105_s24 + $0x64] ss:$16 sps:$4 sm:$0xff]   ;;  %v3494_v62 = vld [vmem:[%s4105_s24 + $0x6c] ss:$16 sps:$4 sm:$0xff]   ;;  %v3496_v63 = vld [vmem:[%s4105_s24 + $0x60] ss:$16 sps:$4 sm:$0xff]  }
 0x20a   : > { %3064 = vmatprep.subr.bf16.mxu1 %v3459_v34  ;;  %v3497_v0 = vld [vmem:[%s4105_s24 + $0x68] ss:$16 sps:$4 sm:$0xff]   ;;  %v3498_v1 = vld [vmem:[%s4105_s24 + $0x84] ss:$16 sps:$4 sm:$0xff]   ;;  %v3500_v2 = vld [vmem:[%s4105_s24 + $0x8c] ss:$16 sps:$4 sm:$0xff]  }
 0x20b   : > { %v3502_v3 = vld [vmem:[%s4105_s24 + $0x80] ss:$16 sps:$4 sm:$0xff]   ;;  %v3503_v4 = vld [vmem:[%s4105_s24 + $0x88] ss:$16 sps:$4 sm:$0xff]   ;;  %v3504_v5 = vld [vmem:[%s4105_s24 + $0xa4] ss:$16 sps:$4 sm:$0xff]  }
 0x20c   : > { %3001 = vmatpush3.bf16.msra.mxu0 %v3460_v35  ;;  %v3506_v6 = vld [vmem:[%s4105_s24 + $0xac] ss:$16 sps:$4 sm:$0xff]   ;;  %v3508_v7 = vld [vmem:[%s4105_s24 + $0xa0] ss:$16 sps:$4 sm:$0xff]   ;;  %v3509_v8 = vld [vmem:[%s4105_s24 + $0xa8] ss:$16 sps:$4 sm:$0xff]  }
 0x20d   : > { %3065 = vmatpush3.bf16.msra.mxu1 %v3461_v36  ;;  %3002 = vmatprep.subr.bf16.mxu0 %v3462_v37  ;;  %v3510_v9 = vld [vmem:[%s4105_s24 + $0xc4] ss:$16 sps:$4 sm:$0xff]   ;;  %v3512_v10 = vld [vmem:[%s4105_s24 + $0xcc] ss:$16 sps:$4 sm:$0xff]   ;;  %v3514_v11 = vld [vmem:[%s4105_s24 + $0xc0] ss:$16 sps:$4 sm:$0xff]  }
 0x20e   : > { %3066 = vmatprep.subr.bf16.mxu1 %v3463_v38  ;;  %v3515_v12 = vld [vmem:[%s4105_s24 + $0xc8] ss:$16 sps:$4 sm:$0xff]   ;;  %v3516_v13 = vld [vmem:[%s4105_s24 + $0xe4] ss:$16 sps:$4 sm:$0xff]   ;;  %v3518_v14 = vld [vmem:[%s4105_s24 + $0xec] ss:$16 sps:$4 sm:$0xff]  }
 0x20f   : > { %v3520_v15 = vld [vmem:[%s4105_s24 + $0xe0] ss:$16 sps:$4 sm:$0xff]   ;;  %v3521_v16 = vld [vmem:[%s4105_s24 + $0xe8] ss:$16 sps:$4 sm:$0xff]  }
 0x210   : > { %3003 = vmatpush3.bf16.msra.mxu0 %v3464_v39  ;;  %v1184_v24 = vld [vmem:[#allocation2] sm:$0xff]  ;;  %v1185_v33 = vld [vmem:[#allocation2 + $0x18] sm:$0xff] }
 0x211   : > { %3067 = vmatpush3.bf16.msra.mxu1 %v3465_v40  ;;  %3004 = vmatprep.subr.bf16.mxu0 %v3466_v41 }
 0x212   : > { %3068 = vmatprep.subr.bf16.mxu1 %v3467_v42  ;;  %v1186_v42 = vld [vmem:[#allocation2 + $0x68] sm:$0xff] }
 0x214   : > { %3005 = vmatpush3.bf16.msra.mxu0 %v3468_v43 }
 0x215   : > { %3069 = vmatpush3.bf16.msra.mxu1 %v3469_v44  ;;  %3006 = vmatprep.subr.bf16.mxu0 %v3470_v45 }
 0x216   : > { %3070 = vmatprep.subr.bf16.mxu1 %v3471_v46 }
 0x218   : > { %3007 = vmatpush3.bf16.msra.mxu0 %v3472_v47 }
 0x219   : > { %3071 = vmatpush3.bf16.msra.mxu1 %v3473_v48 }
 0x21b   : > { %1681 = vmatmul.mubr.bf16.vlgmr.msra.gmra.mxu0 %v3474_v49 }
 0x21c   : > { %1778 = vmatmul.mubr.bf16.vlgmr.msra.gmra.mxu1 %v3477_v51  ;;  %1688 = vmatprep.mubr.bf16.mxu0 %v3480_v53  ;;  %v1187_v51 = vld [vmem:[#allocation2 + $0x48] sm:$0xff] }
 0x21d   : > { %1785 = vmatprep.mubr.bf16.mxu1 %v3482_v54 }
 0x223   : > { %1689 = vmatmul.mubr.bf16.gmra.mxu0 %v3484_v55 }
 0x224   : > { %1786 = vmatmul.mubr.bf16.gmra.mxu1 %v3485_v56  ;;  %1696 = vmatprep.mubr.bf16.mxu0 %v3486_v57 }
 0x225   : > { %1793 = vmatprep.mubr.bf16.mxu1 %v3488_v58 }
 0x22b   : > { %1697 = vmatmul.mubr.bf16.gmra.mxu0 %v3490_v59 }
 0x22c   : > { %1794 = vmatmul.mubr.bf16.gmra.mxu1 %v3491_v60  ;;  %1704 = vmatprep.mubr.bf16.mxu0 %v3492_v61  ;;  %v1188_v60 = vld [vmem:[#allocation2 + $0x88] sm:$0xff] }
 0x22d   : > { %1801 = vmatprep.mubr.bf16.mxu1 %v3494_v62 }
 0x233   : > { %1705 = vmatmul.mubr.bf16.gmra.mxu0 %v3496_v63 }
 0x234   : > { %1802 = vmatmul.mubr.bf16.gmra.mxu1 %v3497_v0  ;;  %1712 = vmatprep.mubr.bf16.mxu0 %v3498_v1 }
 0x235   : > { %1809 = vmatprep.mubr.bf16.mxu1 %v3500_v2 }
 0x23b   : > { %1713 = vmatmul.mubr.bf16.gmra.mxu0 %v3502_v3 }
 0x23c   : > { %1810 = vmatmul.mubr.bf16.gmra.mxu1 %v3503_v4  ;;  %1720 = vmatprep.mubr.bf16.mxu0 %v3504_v5  ;;  %v1189_v5 = vld [vmem:[#allocation2 + $0xb8] sm:$0xff] }
 0x23d   : > { %1817 = vmatprep.mubr.bf16.mxu1 %v3506_v6 }
 0x243   : > { %1721 = vmatmul.mubr.bf16.gmra.mxu0 %v3508_v7 }
 0x244   : > { %1818 = vmatmul.mubr.bf16.gmra.mxu1 %v3509_v8  ;;  %1728 = vmatprep.mubr.bf16.mxu0 %v3510_v9 }
 0x245   : > { %1825 = vmatprep.mubr.bf16.mxu1 %v3512_v10 }
 0x24b   : > { %1729 = vmatmul.mubr.bf16.gmra.mxu0 %v3514_v11 }
 0x24c   : > { %1826 = vmatmul.mubr.bf16.gmra.mxu1 %v3515_v12  ;;  %1736 = vmatprep.mubr.bf16.mxu0 %v3516_v13 }
 0x24d   : > { %1833 = vmatprep.mubr.bf16.mxu1 %v3518_v14  ;;  %v1190_v14 = vld [vmem:[#allocation2 + $0xf0] sm:$0xff] }
 0x253   : > { %1737 = vmatmul.mubr.bf16.gmra.mxu0 %v3520_v15 }
 0x254   : > { %1834 = vmatmul.mubr.bf16.gmra.mxu1 %v3521_v16 }
 0x2db   : > { %v3008_v17 = vpop.f32.mrf.mxu0 }
 0x2dc   : > { %v3072_v18 = vpop.f32.mrf.mxu1 }
 0x2dd   : > { %v3009_v19 = vpop.f32.mrf.mxu0 }
 0x2de   : > { %v3010_v20 = vadd.f32 %v3009_v19, %v3008_v17  ;;  %v3073_v21 = vpop.f32.mrf.mxu1 }
 0x2df   : > { %v3074_v22 = vadd.f32 %v3073_v21, %v3072_v18  ;;  %v3011_v23 = vpop.f32.mrf.mxu0 }
 0x2e0   : > { %v3075_v25 = vpop.f32.mrf.mxu1 }
 0x2e1   : > { %v1780_v26 = vadd.f32 %v3074_v22, %v3010_v20  ;;  %v3012_v27 = vpop.f32.mrf.mxu0 }
 0x2e2   : > { %v3013_v28 = vadd.f32 %v3012_v27, %v3011_v23  ;;  %v3076_v29 = vpop.f32.mrf.mxu1  ;;  %v1191_v23 = vld [vmem:[#allocation2 + $0x78] sm:$0xff] }
 0x2e3   : > { %v1842_v30 = vadd.f32 %v1780_v26, %v1184_v24  ;;  %v3077_v31 = vadd.f32 %v3076_v29, %v3075_v25  ;;  %v3014_v32 = vpop.f32.mrf.mxu0 }
 0x2e4   : > { %v3078_v34 = vpop.f32.mrf.mxu1 }
 0x2e5   : > { %1858 = vst [vmem:[#allocation2] sm:$0xff] %v1842_v30  ;;  %v1783_v35 = vadd.f32 %v3077_v31, %v3013_v28  ;;  %v3015_v36 = vpop.f32.mrf.mxu0 }
 0x2e6   : > { %v3016_v37 = vadd.f32 %v3015_v36, %v3014_v32  ;;  %v3079_v38 = vpop.f32.mrf.mxu1  ;;  %v1192_v32 = vld [vmem:[#allocation2 + $0x58] sm:$0xff] }
 0x2e7   : > { %v1843_v39 = vadd.f32 %v1783_v35, %v1185_v33  ;;  %v3080_v40 = vadd.f32 %v3079_v38, %v3078_v34  ;;  %v3017_v41 = vpop.f32.mrf.mxu0 }
 0x2e8   : > { %v3081_v43 = vpop.f32.mrf.mxu1 }
 0x2e9   : > { %1859 = vst [vmem:[#allocation2 + $0x18] sm:$0xff] %v1843_v39  ;;  %v1788_v44 = vadd.f32 %v3080_v40, %v3016_v37  ;;  %v3018_v45 = vpop.f32.mrf.mxu0 }
 0x2ea   : > { %v3019_v46 = vadd.f32 %v3018_v45, %v3017_v41  ;;  %v3082_v47 = vpop.f32.mrf.mxu1  ;;  %v1193_v41 = vld [vmem:[#allocation2 + $0xc8] sm:$0xff] }
 0x2eb   : > { %v1844_v48 = vadd.f32 %v1788_v44, %v1186_v42  ;;  %v3083_v49 = vadd.f32 %v3082_v47, %v3081_v43  ;;  %v3020_v50 = vpop.f32.mrf.mxu0 }
 0x2ec   : > { %v3084_v52 = vpop.f32.mrf.mxu1 }
 0x2ed   : > { %1860 = vst [vmem:[#allocation2 + $0x68] sm:$0xff] %v1844_v48  ;;  %v1791_v53 = vadd.f32 %v3083_v49, %v3019_v46  ;;  %v3021_v54 = vpop.f32.mrf.mxu0 }
 0x2ee   : > { %v3022_v55 = vadd.f32 %v3021_v54, %v3020_v50  ;;  %v3085_v56 = vpop.f32.mrf.mxu1  ;;  %v1194_v50 = vld [vmem:[#allocation2 + $0x90] sm:$0xff] }
 0x2ef   : > { %v1845_v57 = vadd.f32 %v1791_v53, %v1187_v51  ;;  %v3086_v58 = vadd.f32 %v3085_v56, %v3084_v52  ;;  %v3023_v59 = vpop.f32.mrf.mxu0 }
 0x2f0   : > { %v3087_v61 = vpop.f32.mrf.mxu1 }
 0x2f1   : > { %1861 = vst [vmem:[#allocation2 + $0x48] sm:$0xff] %v1845_v57  ;;  %v1796_v62 = vadd.f32 %v3086_v58, %v3022_v55  ;;  %v3024_v63 = vpop.f32.mrf.mxu0 }
 0x2f2   : > { %v3025_v0 = vadd.f32 %v3024_v63, %v3023_v59  ;;  %v3088_v1 = vpop.f32.mrf.mxu1  ;;  %v1195_v59 = vld [vmem:[#allocation2 + $0xc0] sm:$0xff] }
 0x2f3   : > { %v1846_v2 = vadd.f32 %v1796_v62, %v1188_v60  ;;  %v3089_v3 = vadd.f32 %v3088_v1, %v3087_v61  ;;  %v3026_v4 = vpop.f32.mrf.mxu0 }
 0x2f4   : > { %v3090_v6 = vpop.f32.mrf.mxu1 }
 0x2f5   : > { %1862 = vst [vmem:[#allocation2 + $0x88] sm:$0xff] %v1846_v2  ;;  %v1799_v7 = vadd.f32 %v3089_v3, %v3025_v0  ;;  %v3027_v8 = vpop.f32.mrf.mxu0 }
 0x2f6   : > { %v3028_v9 = vadd.f32 %v3027_v8, %v3026_v4  ;;  %v3091_v10 = vpop.f32.mrf.mxu1  ;;  %v1196_v4 = vld [vmem:[#allocation2 + $0xd0] sm:$0xff] }
 0x2f7   : > { %v1847_v11 = vadd.f32 %v1799_v7, %v1189_v5  ;;  %v3092_v12 = vadd.f32 %v3091_v10, %v3090_v6  ;;  %v3029_v13 = vpop.f32.mrf.mxu0 }
 0x2f8   : > { %v3093_v15 = vpop.f32.mrf.mxu1 }
 0x2f9   : > { %1863 = vst [vmem:[#allocation2 + $0xb8] sm:$0xff] %v1847_v11  ;;  %v1804_v16 = vadd.f32 %v3092_v12, %v3028_v9  ;;  %v3030_v17 = vpop.f32.mrf.mxu0 }
 0x2fa   : > { %v3031_v18 = vadd.f32 %v3030_v17, %v3029_v13  ;;  %v3094_v19 = vpop.f32.mrf.mxu1  ;;  %v1197_v13 = vld [vmem:[#allocation2 + $0x28] sm:$0xff] }
 0x2fb   : > { %v1848_v20 = vadd.f32 %v1804_v16, %v1190_v14  ;;  %v3095_v21 = vadd.f32 %v3094_v19, %v3093_v15  ;;  %v3032_v22 = vpop.f32.mrf.mxu0 }
 0x2fc   : > { %v3096_v24 = vpop.f32.mrf.mxu1 }
 0x2fd   : > { %1864 = vst [vmem:[#allocation2 + $0xf0] sm:$0xff] %v1848_v20  ;;  %v1807_v25 = vadd.f32 %v3095_v21, %v3031_v18  ;;  %v3033_v26 = vpop.f32.mrf.mxu0 }
 0x2fe   : > { %v3034_v27 = vadd.f32 %v3033_v26, %v3032_v22  ;;  %v3097_v28 = vpop.f32.mrf.mxu1  ;;  %v1198_v22 = vld [vmem:[#allocation2 + $0xf8] sm:$0xff] }
 0x2ff   : > { %v1849_v29 = vadd.f32 %v1807_v25, %v1191_v23  ;;  %v3098_v30 = vadd.f32 %v3097_v28, %v3096_v24  ;;  %v3035_v31 = vpop.f32.mrf.mxu0 }
 0x300   : > { %v3099_v33 = vpop.f32.mrf.mxu1 }
 0x301   : > { %1865 = vst [vmem:[#allocation2 + $0x78] sm:$0xff] %v1849_v29  ;;  %v1812_v34 = vadd.f32 %v3098_v30, %v3034_v27  ;;  %v3036_v35 = vpop.f32.mrf.mxu0  ;;  %v1199_v30 = vld [vmem:[#allocation2 + $0x98] sm:$0xff] }
 0x302   : > { %v3037_v36 = vadd.f32 %v3036_v35, %v3035_v31  ;;  %v3100_v37 = vpop.f32.mrf.mxu1 }
 0x303   : > { %v1850_v38 = vadd.f32 %v1812_v34, %v1192_v32  ;;  %v3101_v39 = vadd.f32 %v3100_v37, %v3099_v33  ;;  %v3038_v40 = vpop.f32.mrf.mxu0 }
 0x304   : > { %v3102_v42 = vpop.f32.mrf.mxu1 }
 0x305   : > { %1866 = vst [vmem:[#allocation2 + $0x58] sm:$0xff] %v1850_v38  ;;  %v1815_v43 = vadd.f32 %v3101_v39, %v3037_v36  ;;  %v3039_v44 = vpop.f32.mrf.mxu0 }
 0x306   : > { %v3040_v45 = vadd.f32 %v3039_v44, %v3038_v40  ;;  %v3103_v46 = vpop.f32.mrf.mxu1 }
 0x307   : > { %v1851_v47 = vadd.f32 %v1815_v43, %v1193_v41  ;;  %v3104_v48 = vadd.f32 %v3103_v46, %v3102_v42  ;;  %v3041_v49 = vpop.f32.mrf.mxu0 }
 0x308   : > { %v3105_v51 = vpop.f32.mrf.mxu1 }
 0x309   : > { %1867 = vst [vmem:[#allocation2 + $0xc8] sm:$0xff] %v1851_v47  ;;  %v1820_v52 = vadd.f32 %v3104_v48, %v3040_v45  ;;  %v3042_v53 = vpop.f32.mrf.mxu0 }
 0x30a   : > { %v3043_v54 = vadd.f32 %v3042_v53, %v3041_v49  ;;  %v3106_v55 = vpop.f32.mrf.mxu1 }
 0x30b   : > { %v1852_v56 = vadd.f32 %v1820_v52, %v1194_v50  ;;  %v3107_v57 = vadd.f32 %v3106_v55, %v3105_v51  ;;  %v3044_v58 = vpop.f32.mrf.mxu0 }
 0x30c   : > { %v3108_v60 = vpop.f32.mrf.mxu1 }
 0x30d   : > { %1868 = vst [vmem:[#allocation2 + $0x90] sm:$0xff] %v1852_v56  ;;  %v1823_v61 = vadd.f32 %v3107_v57, %v3043_v54  ;;  %v3045_v62 = vpop.f32.mrf.mxu0 }
 0x30e   : > { %v3046_v63 = vadd.f32 %v3045_v62, %v3044_v58  ;;  %v3109_v0 = vpop.f32.mrf.mxu1 }
 0x30f   : > { %v1853_v1 = vadd.f32 %v1823_v61, %v1195_v59  ;;  %v3110_v2 = vadd.f32 %v3109_v0, %v3108_v60  ;;  %v3047_v3 = vpop.f32.mrf.mxu0 }
 0x310   : > { %v3111_v5 = vpop.f32.mrf.mxu1 }
 0x311   : > { %1869 = vst [vmem:[#allocation2 + $0xc0] sm:$0xff] %v1853_v1  ;;  %v1828_v6 = vadd.f32 %v3110_v2, %v3046_v63  ;;  %v3048_v7 = vpop.f32.mrf.mxu0 }
 0x312   : > { %v3049_v8 = vadd.f32 %v3048_v7, %v3047_v3  ;;  %v3112_v9 = vpop.f32.mrf.mxu1 }
 0x313   : > { %v1854_v10 = vadd.f32 %v1828_v6, %v1196_v4  ;;  %v3113_v11 = vadd.f32 %v3112_v9, %v3111_v5  ;;  %v3050_v12 = vpop.f32.mrf.mxu0 }
 0x314   : > { %v3114_v14 = vpop.f32.mrf.mxu1 }
 0x315   : > { %1870 = vst [vmem:[#allocation2 + $0xd0] sm:$0xff] %v1854_v10  ;;  %v1831_v15 = vadd.f32 %v3113_v11, %v3049_v8  ;;  %v3051_v16 = vpop.f32.mrf.mxu0 }
 0x316   : > { %v3052_v17 = vadd.f32 %v3051_v16, %v3050_v12  ;;  %v3115_v18 = vpop.f32.mrf.mxu1 }
 0x317   : > { %v1855_v19 = vadd.f32 %v1831_v15, %v1197_v13  ;;  %v3116_v20 = vadd.f32 %v3115_v18, %v3114_v14  ;;  %v3053_v21 = vpop.f32.mrf.mxu0 }
 0x318   : > { %v3117_v23 = vpop.f32.mrf.mxu1 }
 0x319   : > { %1871 = vst [vmem:[#allocation2 + $0x28] sm:$0xff] %v1855_v19  ;;  %v1836_v24 = vadd.f32 %v3116_v20, %v3052_v17  ;;  %v3054_v25 = vpop.f32.mrf.mxu0 }
 0x31a   : > { %v3055_v26 = vadd.f32 %v3054_v25, %v3053_v21  ;;  %v3118_v27 = vpop.f32.mrf.mxu1 }
 0x31b   : > { %v1856_v28 = vadd.f32 %v1836_v24, %v1198_v22  ;;  %v3119_v29 = vadd.f32 %v3118_v27, %v3117_v23 }
 0x31d   : > { %1872 = vst [vmem:[#allocation2 + $0xf8] sm:$0xff] %v1856_v28  ;;  %v1839_v31 = vadd.f32 %v3119_v29, %v3055_v26 }
 0x31f   : > { %v1857_v32 = vadd.f32 %v1839_v31, %v1199_v30 }
 0x321   : > { %1873 = vst [vmem:[#allocation2 + $0x98] sm:$0xff] %v1857_v32 }
 0x322 PF: > { %p2824_p0 = scmp.ne.s32.totalorder %s3784_s20, 1 }
 0x323   : > { %s4473_s27 = sld [smem:[#allocation26_spill]] (!%p2824_p0) }
 0x324   : > { %1877 = sbr.rel (%p2824_p0) target bundleno = 1206 (0x4b6), region = 80  ;;  %s4474_s15 = sld [smem:[#allocation27_spill]] (!%p2824_p0) }
 0x329   : > { %v1912_v33 = vld [vmem:[%s4427_s2 + $0x10] sm:$0xff]  ;;  %v1910_v34 = vld [vmem:[%s4427_s2] sm:$0xff]  ;;  %v3805_v35 = vmov 0   ;;  %v1913_v36 = vld [vmem:[%s4427_s2 + $0x18] sm:$0xff] }
 0x32a   : > { %3523 = vset.pattern.permute.xlu1 %v3805_v35  ;;  %3522 = vset.pattern.permute.xlu0 %v3805_v35  ;;  %v1911_v37 = vld [vmem:[%s4427_s2 + $0x8] sm:$0xff]  ;;  %v1914_v39 = vld [vmem:[%s4427_s2 + $0x20] sm:$0xff]  ;;  %v3524_v40 = vld [vmem:[%s4473_s27 + $0x78] sm:$0xff]  }
 0x32b   : > { %1938 = vperm.xlu1 %3523, %v1912_v33   ;;  %1928 = vperm.xlu0 %3522, %v1910_v34   ;;  %v1915_v38 = vld [vmem:[%s4427_s2 + $0x28] sm:$0xff]  ;;  %v3525_v41 = vld [vmem:[%s4473_s27 + $0x38] sm:$0xff]   ;;  %v1916_v44 = vld [vmem:[%s4427_s2 + $0x30] sm:$0xff] }
 0x32c   : > { %3120 = vmatprep.subr.bf16.mxu0 %v3524_v40  ;;  %v3526_v42 = vld [vmem:[#allocation12 + $0x38] sm:$0xff]   ;;  %v3527_v45 = vld [vmem:[%s4473_s27 + $0x70] sm:$0xff]   ;;  %v3530_v48 = vld [vmem:[%s4473_s27 + $0x68] sm:$0xff]  }
 0x32d   : > { %v1917_v43 = vld [vmem:[%s4427_s2 + $0x38] sm:$0xff]  ;;  %3121 = vmatpush3.bf16.msra.mxu0 %v3525_v41  ;;  %v3528_v46 = vld [vmem:[%s4473_s27 + $0x30] sm:$0xff]   ;;  %3200 = vmatprep.subr.bf16.mxu1 %v3526_v42  ;;  %v1919_v49 = vld [vmem:[%s4427_s2 + $0x48] sm:$0xff] }
 0x32e   : > { %3122 = vmatprep.subr.bf16.mxu0 %v3527_v45  ;;  %v3529_v47 = vld [vmem:[#allocation12 + $0x30] sm:$0xff]   ;;  %3201 = vmatpush3.bf16.msra.mxu1 %v3526_v42  ;;  %v1918_v50 = vld [vmem:[%s4427_s2 + $0x40] sm:$0xff]  ;;  %v3531_v51 = vld [vmem:[%s4473_s27 + $0x28] sm:$0xff]  }
 0x32f   : > { %1943 = vperm.xlu1 %3523, %v1913_v36   ;;  %1933 = vperm.xlu0 %3522, %v1911_v37   ;;  %v3532_v52 = vld [vmem:[#allocation12 + $0x28] sm:$0xff]   ;;  %v3533_v53 = vld [vmem:[%s4473_s27 + $0x60] sm:$0xff]   ;;  %v1921_v55 = vld [vmem:[%s4427_s2 + $0x58] sm:$0xff] }
 0x330   : > { %3202 = vmatprep.subr.bf16.mxu1 %v3529_v47  ;;  %v3534_v54 = vld [vmem:[%s4473_s27 + $0x20] sm:$0xff]   ;;  %v1920_v57 = vld [vmem:[%s4427_s2 + $0x50] sm:$0xff]  ;;  %v3536_v58 = vld [vmem:[%s4473_s27 + $0x58] sm:$0xff]  }
 0x331   : > { %3123 = vmatpush3.bf16.msra.mxu0 %v3528_v46  ;;  %v3535_v56 = vld [vmem:[#allocation12 + $0x20] sm:$0xff]   ;;  %v3537_v59 = vld [vmem:[%s4473_s27 + $0x18] sm:$0xff]   ;;  %v1923_v61 = vld [vmem:[%s4427_s2 + $0x68] sm:$0xff] }
 0x332   : > { %3124 = vmatprep.subr.bf16.mxu0 %v3530_v48  ;;  %3203 = vmatpush3.bf16.msra.mxu1 %v3529_v47  ;;  %v3538_v60 = vld [vmem:[#allocation12 + $0x18] sm:$0xff]   ;;  %v1922_v62 = vld [vmem:[%s4427_s2 + $0x60] sm:$0xff]  ;;  %v3539_v63 = vld [vmem:[%s4473_s27 + $0x50] sm:$0xff]  }
 0x333   : > { %1953 = vperm.xlu1 %3523, %v1915_v38   ;;  %1948 = vperm.xlu0 %3522, %v1914_v39   ;;  %v3540_v0 = vld [vmem:[%s4473_s27 + $0x10] sm:$0xff]   ;;  %v1925_v2 = vld [vmem:[%s4427_s2 + $0x78] sm:$0xff]  ;;  %v3542_v4 = vld [vmem:[%s4473_s27 + $0x48] sm:$0xff]  }
 0x334   : > { %3204 = vmatprep.subr.bf16.mxu1 %v3532_v52  ;;  %v3541_v1 = vld [vmem:[#allocation12 + $0x10] sm:$0xff]   ;;  %v3543_v5 = vld [vmem:[%s4473_s27 + $0x8] sm:$0xff]   ;;  %v3545_v7 = vld [vmem:[%s4473_s27 + $0x40] sm:$0xff]  }
 0x335   : > { %3125 = vmatpush3.bf16.msra.mxu0 %v3531_v51  ;;  %v1924_v3 = vld [vmem:[%s4427_s2 + $0x70] sm:$0xff]  ;;  %v3544_v6 = vld [vmem:[#allocation12 + $0x8] sm:$0xff]   ;;  %v3546_v8 = vld [vmem:[%s4473_s27] sm:$0xff]  }
 0x336   : > { %3126 = vmatprep.subr.bf16.mxu0 %v3533_v53  ;;  %3205 = vmatpush3.bf16.msra.mxu1 %v3532_v52  ;;  %v3547_v9 = vld [vmem:[#allocation12] sm:$0xff]   ;;  %v3549_v11 = vld [vmem:[#allocation6 + $0x8] sm:$0xff]   ;;  %v3550_v12 = vld [vmem:[#allocation6 + $0x10] sm:$0xff]  }
 0x337   : > { %1963 = vperm.xlu1 %3523, %v1917_v43   ;;  %1958 = vperm.xlu0 %3522, %v1916_v44   ;;  %v3548_v10 = vld [vmem:[#allocation6] sm:$0xff]   ;;  %v3551_v13 = vld [vmem:[#allocation6 + $0x18] sm:$0xff]   ;;  %v3553_v15 = vld [vmem:[#allocation6 + $0x28] sm:$0xff]  }
 0x338   : > { %3206 = vmatprep.subr.bf16.mxu1 %v3535_v56  ;;  %3216 = vmatprep.mubr.bf16.mxu1 %v3548_v10  ;;  %v3552_v14 = vld [vmem:[#allocation6 + $0x20] sm:$0xff]   ;;  %v3554_v16 = vld [vmem:[#allocation6 + $0x30] sm:$0xff]   ;;  %v3555_v17 = vld [vmem:[#allocation6 + $0x38] sm:$0xff]  }
 0x339   : > { %3127 = vmatpush3.bf16.msra.mxu0 %v3534_v54  ;;  %v1883_v19 = vld [vmem:[#allocation2 + $0x68] sm:$0xff]  ;;  %v1878_v21 = vld [vmem:[#allocation2 + $0xb0] sm:$0xff]  ;;  %v1879_v22 = vld [vmem:[#allocation2] sm:$0xff] }
 0x33a   : > { %3128 = vmatprep.subr.bf16.mxu0 %v3536_v58  ;;  %3207 = vmatpush3.bf16.msra.mxu1 %v3535_v56  ;;  %v1885_v23 = vld [vmem:[#allocation2 + $0x48] sm:$0xff]  ;;  %v1880_v24 = vld [vmem:[#allocation2 + $0xd8] sm:$0xff]  ;;  %v1882_v37 = vld [vmem:[#allocation2 + $0x50] sm:$0xff] }
 0x33b   : > { %1973 = vperm.xlu1 %3523, %v1919_v49   ;;  %1968 = vperm.xlu0 %3522, %v1918_v50   ;;  %v1881_v25 = vld [vmem:[#allocation2 + $0x18] sm:$0xff]  ;;  %v1884_v38 = vld [vmem:[#allocation2 + $0x30] sm:$0xff]  ;;  %v1887_v42 = vld [vmem:[#allocation2 + $0x88] sm:$0xff] }
 0x33c   : > { %3208 = vmatprep.subr.bf16.mxu1 %v3538_v60  ;;  %v1889_v40 = vld [vmem:[#allocation2 + $0xb8] sm:$0xff]  ;;  %v1888_v48 = vld [vmem:[#allocation2 + $0xe8] sm:$0xff]  ;;  %v1886_v49 = vld [vmem:[#allocation2 + $0x80] sm:$0xff] }
 0x33d   : > { %3129 = vmatpush3.bf16.msra.mxu0 %v3537_v59  ;;  %v1893_v52 = vld [vmem:[#allocation2 + $0x78] sm:$0xff]  ;;  %v1891_v54 = vld [vmem:[#allocation2 + $0xf0] sm:$0xff] }
 0x33e   : > { %3130 = vmatprep.subr.bf16.mxu0 %v3539_v63  ;;  %3209 = vmatpush3.bf16.msra.mxu1 %v3538_v60  ;;  %v1892_v60 = vld [vmem:[#allocation2 + $0x8] sm:$0xff] }
 0x33f   : > { %1983 = vperm.xlu1 %3523, %v1921_v55   ;;  %1978 = vperm.xlu0 %3522, %v1920_v57  }
 0x340   : > { %3210 = vmatprep.subr.bf16.mxu1 %v3541_v1 }
 0x341   : > { %3131 = vmatpush3.bf16.msra.mxu0 %v3540_v0  ;;  %v1897_v0 = vld [vmem:[#allocation2 + $0xc8] sm:$0xff] }
 0x342   : > { %3132 = vmatprep.subr.bf16.mxu0 %v3542_v4  ;;  %3211 = vmatpush3.bf16.msra.mxu1 %v3541_v1 }
 0x343   : > { %1993 = vperm.xlu1 %3523, %v1923_v61   ;;  %1988 = vperm.xlu0 %3522, %v1922_v62   ;;  %v1890_v61 = vld [vmem:[#allocation2 + $0x60] sm:$0xff] }
 0x344   : > { %3212 = vmatprep.subr.bf16.mxu1 %v3544_v6 }
 0x345   : > { %3133 = vmatpush3.bf16.msra.mxu0 %v3543_v5 }
 0x346   : > { %3134 = vmatprep.subr.bf16.mxu0 %v3545_v7  ;;  %3213 = vmatpush3.bf16.msra.mxu1 %v3544_v6 }
 0x347   : > { %2003 = vperm.xlu1 %3523, %v1925_v2   ;;  %1998 = vperm.xlu0 %3522, %v1924_v3   ;;  %v1895_v2 = vld [vmem:[#allocation2 + $0x58] sm:$0xff] }
 0x348   : > { %3214 = vmatprep.subr.bf16.mxu1 %v3547_v9 }
 0x349   : > { %3135 = vmatpush3.bf16.msra.mxu0 %v3546_v8  ;;  %v1896_v8 = vld [vmem:[#allocation2 + $0x40] sm:$0xff] }
 0x34a   : > { %3215 = vmatpush3.bf16.msra.mxu1 %v3547_v9  ;;  %v1894_v9 = vld [vmem:[#allocation2 + $0x38] sm:$0xff] }
 0x34d   : > { %3217 = vmatmul.mubr.bf16.vlgmr.msra.gmra.mxu1 %v3549_v11 }
 0x34e   : > { %3220 = vmatprep.mubr.bf16.mxu1 %v3550_v12  ;;  %v1901_v12 = vld [vmem:[#allocation2 + $0xc0] sm:$0xff] }
 0x355   : > { %3221 = vmatmul.mubr.bf16.gmra.mxu1 %v3551_v13 }
 0x356   : > { %3224 = vmatprep.mubr.bf16.mxu1 %v3552_v14  ;;  %v1899_v14 = vld [vmem:[#allocation2 + $0x90] sm:$0xff] }
 0x35d   : > { %3225 = vmatmul.mubr.bf16.gmra.mxu1 %v3553_v15 }
 0x35e   : > { %3228 = vmatprep.mubr.bf16.mxu1 %v3554_v16 }
 0x365   : > { %3229 = vmatmul.mubr.bf16.gmra.mxu1 %v3555_v17 }
 0x3a6   : > { %v1939_v18 = vpop.permute.xlu1 %1938  ;;  %v1929_v20 = vpop.permute.xlu0 %1928 }
 0x3a7   : > { %v2011_v26 = vmul.f32 %v1939_v18, %v1883_v19  ;;  %v2006_v27 = vmul.f32 %v1929_v20, %v1878_v21  ;;  %v2007_v30 = vmul.f32 %v1929_v20, %v1879_v22  ;;  %v2010_v43 = vmul.f32 %v1939_v18, %v1882_v37  ;;  %v1900_v20 = vld [vmem:[#allocation2 + $0x70] sm:$0xff]  ;;  %v1898_v21 = vld [vmem:[#allocation2 + $0xe0] sm:$0xff] }
 0x3aa   : > { %v1944_v28 = vpop.permute.xlu1 %1943  ;;  %v1934_v29 = vpop.permute.xlu0 %1933 }
 0x3ab   : > { %v2013_v31 = vmul.f32 %v1944_v28, %v1885_v23  ;;  %v2008_v32 = vmul.f32 %v1934_v29, %v1880_v24  ;;  %v2009_v33 = vmul.f32 %v1934_v29, %v1881_v25  ;;  %v2012_v44 = vmul.f32 %v1944_v28, %v1884_v38  ;;  %v1905_v24 = vld [vmem:[#allocation2 + $0x28] sm:$0xff]  ;;  %v1907_v38 = vld [vmem:[#allocation2 + $0xf8] sm:$0xff] }
 0x3ad   : > { %v2041_v34 = vpack.c.bf16 %v2013_v31, %v2011_v26  ;;  %v2038_v35 = vpack.c.bf16 %v2008_v32, %v2006_v27  ;;  %v2039_v36 = vpack.c.bf16 %v2009_v33, %v2007_v30  ;;  %v2040_v47 = vpack.c.bf16 %v2012_v44, %v2010_v43  ;;  %v1903_v26 = vld [vmem:[#allocation2 + $0xd0] sm:$0xff]  ;;  %v1902_v33 = vld [vmem:[#allocation2 + $0xa8] sm:$0xff]  ;;  %v1908_v44 = vld [vmem:[#allocation2 + $0x20] sm:$0xff] }
 0x3ae   : > { %v1954_v39 = vpop.permute.xlu1 %1953  ;;  %v1949_v41 = vpop.permute.xlu0 %1948  ;;  %v1904_v32 = vld [vmem:[#allocation2 + $0x10] sm:$0xff] }
 0x3af   : > { %2246 = vmatprep.mubr.bf16.mxu0 %v2039_v36  ;;  %v2017_v45 = vmul.f32 %v1954_v39, %v1889_v40  ;;  %v2015_v46 = vmul.f32 %v1949_v41, %v1887_v42  ;;  %v2016_v55 = vmul.f32 %v1954_v39, %v1888_v48  ;;  %v2014_v56 = vmul.f32 %v1949_v41, %v1886_v49  ;;  %v1909_v36 = vld [vmem:[#allocation2 + $0x98] sm:$0xff] }
 0x3b0   : > { %2247 = vmatmul.mubr.bf16.vlgmr.msra.gmra.mxu0 %v2038_v35 }
 0x3b1   : > { %2254 = vmatprep.mubr.bf16.mxu0 %v2041_v34  ;;  %v2043_v50 = vpack.c.bf16 %v2017_v45, %v2015_v46  ;;  %v2042_v59 = vpack.c.bf16 %v2016_v55, %v2014_v56  ;;  %v1906_v45 = vld [vmem:[#allocation2 + $0xa0] sm:$0xff] }
 0x3b2   : > { %v1964_v51 = vpop.permute.xlu1 %1963  ;;  %v1959_v53 = vpop.permute.xlu0 %1958 }
 0x3b3   : > { %v2021_v57 = vmul.f32 %v1964_v51, %v1893_v52  ;;  %v2019_v58 = vmul.f32 %v1959_v53, %v1891_v54  ;;  %v2020_v3 = vmul.f32 %v1964_v51, %v1892_v60  ;;  %v2018_v4 = vmul.f32 %v1959_v53, %v1890_v61 }
 0x3b5   : > { %v2045_v62 = vpack.c.bf16 %v2021_v57, %v2019_v58  ;;  %v2044_v7 = vpack.c.bf16 %v2020_v3, %v2018_v4  ;;  %v4368_v57 = vld [vmem:[%s4474_s15] ss:$0 sm:$0xff] }
 0x3b6   : > { %v1974_v63 = vpop.permute.xlu1 %1973  ;;  %v1969_v1 = vpop.permute.xlu0 %1968 }
 0x3b7   : > { %v2025_v5 = vmul.f32 %v1974_v63, %v1897_v0  ;;  %v2023_v6 = vmul.f32 %v1969_v1, %v1895_v2  ;;  %v2024_v15 = vmul.f32 %v1974_v63, %v1896_v8  ;;  %v2022_v16 = vmul.f32 %v1969_v1, %v1894_v9 }
 0x3b8   : > { %2255 = vmatmul.mubr.bf16.gmra.mxu0 %v2040_v47 }
 0x3b9   : > { %2262 = vmatprep.mubr.bf16.mxu0 %v2043_v50  ;;  %v2047_v10 = vpack.c.bf16 %v2025_v5, %v2023_v6  ;;  %v2046_v19 = vpack.c.bf16 %v2024_v15, %v2022_v16 }
 0x3ba   : > { %v1984_v11 = vpop.permute.xlu1 %1983  ;;  %v1979_v13 = vpop.permute.xlu0 %1978 }
 0x3bb   : > { %v2029_v17 = vmul.f32 %v1984_v11, %v1901_v12  ;;  %v2027_v18 = vmul.f32 %v1979_v13, %v1899_v14  ;;  %v2028_v27 = vmul.f32 %v1984_v11, %v1900_v20  ;;  %v2026_v28 = vmul.f32 %v1979_v13, %v1898_v21 }
 0x3bd   : > { %v2049_v22 = vpack.c.bf16 %v2029_v17, %v2027_v18  ;;  %v2048_v31 = vpack.c.bf16 %v2028_v27, %v2026_v28 }
 0x3be   : > { %v1994_v23 = vpop.permute.xlu1 %1993  ;;  %v1989_v25 = vpop.permute.xlu0 %1988 }
 0x3bf   : > { %v2033_v29 = vmul.f32 %v1994_v23, %v1905_v24  ;;  %v2031_v30 = vmul.f32 %v1989_v25, %v1903_v26  ;;  %v2032_v39 = vmul.f32 %v1994_v23, %v1904_v32  ;;  %v2030_v40 = vmul.f32 %v1989_v25, %v1902_v33 }
 0x3c0   : > { %2263 = vmatmul.mubr.bf16.gmra.mxu0 %v2042_v59 }
 0x3c1   : > { %2270 = vmatprep.mubr.bf16.mxu0 %v2045_v62  ;;  %v2051_v34 = vpack.c.bf16 %v2033_v29, %v2031_v30  ;;  %v2050_v43 = vpack.c.bf16 %v2032_v39, %v2030_v40 }
 0x3c2   : > { %v2004_v35 = vpop.permute.xlu1 %2003  ;;  %v1999_v37 = vpop.permute.xlu0 %1998 }
 0x3c3   : > { %v2037_v41 = vmul.f32 %v2004_v35, %v1909_v36  ;;  %v2035_v42 = vmul.f32 %v1999_v37, %v1907_v38  ;;  %v2036_v47 = vmul.f32 %v2004_v35, %v1908_v44  ;;  %v2034_v48 = vmul.f32 %v1999_v37, %v1906_v45 }
 0x3c5   : > { %v2053_v46 = vpack.c.bf16 %v2037_v41, %v2035_v42  ;;  %v2052_v49 = vpack.c.bf16 %v2036_v47, %v2034_v48 }
 0x3c8   : > { %2271 = vmatmul.mubr.bf16.gmra.mxu0 %v2044_v7 }
 0x3c9   : > { %2278 = vmatprep.mubr.bf16.mxu0 %v2047_v10 }
 0x3d0   : > { %2279 = vmatmul.mubr.bf16.gmra.mxu0 %v2046_v19 }
 0x3d1   : > { %2286 = vmatprep.mubr.bf16.mxu0 %v2049_v22 }
 0x3d8   : > { %2287 = vmatmul.mubr.bf16.gmra.mxu0 %v2048_v31 }
 0x3d9   : > { %2294 = vmatprep.mubr.bf16.mxu0 %v2051_v34 }
 0x3e0   : > { %2295 = vmatmul.mubr.bf16.gmra.mxu0 %v2050_v43 }
 0x3e1   : > { %2302 = vmatprep.mubr.bf16.mxu0 %v2053_v46 }
 0x3e8   : > { %2303 = vmatmul.mubr.bf16.gmra.mxu0 %v2052_v49 }
 0x40d   : > { %v3218_v50 = vpop.f32.mrf.mxu1 }
 0x40f   : > { %v2441_v51 = vpop.f32.mrf.mxu1 }
 0x411   : > { %v3219_v54 = vpop.f32.mrf.mxu1 }
 0x413   : > { %v2444_v60 = vpop.f32.mrf.mxu1 }
 0x415   : > { %v3222_v2 = vpop.f32.mrf.mxu1 }
 0x417   : > { %v2457_v8 = vpop.f32.mrf.mxu1 }
 0x419   : > { %v3223_v14 = vpop.f32.mrf.mxu1 }
 0x41b   : > { %v2460_v20 = vpop.f32.mrf.mxu1 }
 0x41d   : > { %v3226_v26 = vpop.f32.mrf.mxu1 }
 0x41f   : > { %v2473_v32 = vpop.f32.mrf.mxu1 }
 0x421   : > { %v3227_v38 = vpop.f32.mrf.mxu1 }
 0x423   : > { %v2476_v44 = vpop.f32.mrf.mxu1 }
 0x470   : > { %v3136_v52 = vpop.f32.mrf.mxu0 }
 0x472   : > { %v3137_v53 = vpop.f32.mrf.mxu0 }
 0x473   : > { %v3138_v55 = vadd.f32 %v3137_v53, %v3136_v52 }
 0x474   : > { %v3139_v56 = vpop.f32.mrf.mxu0 }
 0x475   : > { %v2442_v58 = vadd.f32 %v3138_v55, %v2441_v51 }
 0x476   : > { %v3140_v59 = vpop.f32.mrf.mxu0 }
 0x477   : > { %v2511_v61 = vadd.f32 %v4368_v57, %v2442_v58  ;;  %v3141_v62 = vadd.f32 %v3140_v59, %v3139_v56 }
 0x478   : > { %v3142_v63 = vpop.f32.mrf.mxu0 }
 0x479   : > { %2527 = vst [vmem:[#allocation14] sm:$0xff] %v2511_v61  ;;  %v2445_v0 = vadd.f32 %v3141_v62, %v2444_v60 }
 0x47a   : > { %v3143_v1 = vpop.f32.mrf.mxu0 }
 0x47b   : > { %v2512_v3 = vadd.f32 %v4368_v57, %v2445_v0  ;;  %v3144_v4 = vadd.f32 %v3143_v1, %v3142_v63 }
 0x47c   : > { %v3145_v5 = vpop.f32.mrf.mxu0 }
 0x47d   : > { %2528 = vst [vmem:[#allocation14 + $0x8] sm:$0xff] %v2512_v3  ;;  %v2450_v6 = vadd.f32 %v3218_v50, %v3144_v4  ;;  %v3230_v50 = vpop.f32.mrf.mxu1 }
 0x47e   : > { %v3146_v7 = vpop.f32.mrf.mxu0 }
 0x47f   : > { %v2513_v9 = vadd.f32 %v4368_v57, %v2450_v6  ;;  %v3147_v10 = vadd.f32 %v3146_v7, %v3145_v5  ;;  %v2489_v56 = vpop.f32.mrf.mxu1 }
 0x480   : > { %v3148_v11 = vpop.f32.mrf.mxu0 }
 0x481   : > { %2529 = vst [vmem:[#allocation14 + $0x10] sm:$0xff] %v2513_v9  ;;  %v2453_v12 = vadd.f32 %v3219_v54, %v3147_v10  ;;  %v3231_v63 = vpop.f32.mrf.mxu1 }
 0x482   : > { %v3149_v13 = vpop.f32.mrf.mxu0 }
 0x483   : > { %v2514_v15 = vadd.f32 %v4368_v57, %v2453_v12  ;;  %v3150_v16 = vadd.f32 %v3149_v13, %v3148_v11  ;;  %v2492_v5 = vpop.f32.mrf.mxu1 }
 0x484   : > { %v3151_v17 = vpop.f32.mrf.mxu0 }
 0x485   : > { %2530 = vst [vmem:[#allocation14 + $0x18] sm:$0xff] %v2514_v15  ;;  %v2458_v18 = vadd.f32 %v3150_v16, %v2457_v8 }
 0x486   : > { %v3152_v19 = vpop.f32.mrf.mxu0 }
 0x487   : > { %v2515_v21 = vadd.f32 %v4368_v57, %v2458_v18  ;;  %v3153_v22 = vadd.f32 %v3152_v19, %v3151_v17 }
 0x488   : > { %v3154_v23 = vpop.f32.mrf.mxu0 }
 0x489   : > { %2531 = vst [vmem:[#allocation14 + $0x20] sm:$0xff] %v2515_v21  ;;  %v2461_v24 = vadd.f32 %v3153_v22, %v2460_v20 }
 0x48a   : > { %v3155_v25 = vpop.f32.mrf.mxu0 }
 0x48b   : > { %v2516_v27 = vadd.f32 %v4368_v57, %v2461_v24  ;;  %v3156_v28 = vadd.f32 %v3155_v25, %v3154_v23 }
 0x48c   : > { %v3157_v29 = vpop.f32.mrf.mxu0 }
 0x48d   : > { %2532 = vst [vmem:[#allocation14 + $0x28] sm:$0xff] %v2516_v27  ;;  %v2466_v30 = vadd.f32 %v3222_v2, %v3156_v28 }
 0x48e   : > { %v3158_v31 = vpop.f32.mrf.mxu0 }
 0x48f   : > { %v2517_v33 = vadd.f32 %v4368_v57, %v2466_v30  ;;  %v3159_v34 = vadd.f32 %v3158_v31, %v3157_v29 }
 0x490   : > { %v3160_v35 = vpop.f32.mrf.mxu0 }
 0x491   : > { %2533 = vst [vmem:[#allocation14 + $0x30] sm:$0xff] %v2517_v33  ;;  %v2469_v36 = vadd.f32 %v3223_v14, %v3159_v34 }
 0x492   : > { %v3161_v37 = vpop.f32.mrf.mxu0 }
 0x493   : > { %v2518_v39 = vadd.f32 %v4368_v57, %v2469_v36  ;;  %v3162_v40 = vadd.f32 %v3161_v37, %v3160_v35 }
 0x494   : > { %v3163_v41 = vpop.f32.mrf.mxu0 }
 0x495   : > { %2534 = vst [vmem:[#allocation14 + $0x38] sm:$0xff] %v2518_v39  ;;  %v2474_v42 = vadd.f32 %v3162_v40, %v2473_v32 }
 0x496   : > { %v3164_v43 = vpop.f32.mrf.mxu0 }
 0x497   : > { %v2519_v45 = vadd.f32 %v4368_v57, %v2474_v42  ;;  %v3165_v46 = vadd.f32 %v3164_v43, %v3163_v41 }
 0x498   : > { %v3166_v47 = vpop.f32.mrf.mxu0 }
 0x499   : > { %2535 = vst [vmem:[#allocation14 + $0x40] sm:$0xff] %v2519_v45  ;;  %v2477_v48 = vadd.f32 %v3165_v46, %v2476_v44 }
 0x49a   : > { %v3167_v49 = vpop.f32.mrf.mxu0 }
 0x49b   : > { %v2520_v51 = vadd.f32 %v4368_v57, %v2477_v48  ;;  %v3168_v52 = vadd.f32 %v3167_v49, %v3166_v47 }
 0x49c   : > { %v3169_v53 = vpop.f32.mrf.mxu0 }
 0x49d   : > { %2536 = vst [vmem:[#allocation14 + $0x48] sm:$0xff] %v2520_v51  ;;  %v2482_v54 = vadd.f32 %v3226_v26, %v3168_v52 }
 0x49e   : > { %v3170_v55 = vpop.f32.mrf.mxu0 }
 0x49f   : > { %v2521_v58 = vadd.f32 %v4368_v57, %v2482_v54  ;;  %v3171_v59 = vadd.f32 %v3170_v55, %v3169_v53 }
 0x4a0   : > { %v3172_v60 = vpop.f32.mrf.mxu0 }
 0x4a1   : > { %2537 = vst [vmem:[#allocation14 + $0x50] sm:$0xff] %v2521_v58  ;;  %v2485_v61 = vadd.f32 %v3227_v38, %v3171_v59 }
 0x4a2   : > { %v3173_v62 = vpop.f32.mrf.mxu0 }
 0x4a3   : > { %v2522_v0 = vadd.f32 %v4368_v57, %v2485_v61  ;;  %v3174_v1 = vadd.f32 %v3173_v62, %v3172_v60 }
 0x4a4   : > { %v3175_v2 = vpop.f32.mrf.mxu0 }
 0x4a5   : > { %2538 = vst [vmem:[#allocation14 + $0x58] sm:$0xff] %v2522_v0  ;;  %v2490_v3 = vadd.f32 %v3174_v1, %v2489_v56 }
 0x4a6   : > { %v3176_v4 = vpop.f32.mrf.mxu0 }
 0x4a7   : > { %v2523_v6 = vadd.f32 %v4368_v57, %v2490_v3  ;;  %v3177_v7 = vadd.f32 %v3176_v4, %v3175_v2 }
 0x4a8   : > { %v3178_v8 = vpop.f32.mrf.mxu0 }
 0x4a9   : > { %2539 = vst [vmem:[#allocation14 + $0x60] sm:$0xff] %v2523_v6  ;;  %v2493_v9 = vadd.f32 %v3177_v7, %v2492_v5 }
 0x4aa   : > { %v3179_v10 = vpop.f32.mrf.mxu0 }
 0x4ab   : > { %v2524_v11 = vadd.f32 %v4368_v57, %v2493_v9  ;;  %v3180_v12 = vadd.f32 %v3179_v10, %v3178_v8 }
 0x4ac   : > { %v3181_v13 = vpop.f32.mrf.mxu0 }
 0x4ad   : > { %2540 = vst [vmem:[#allocation14 + $0x68] sm:$0xff] %v2524_v11  ;;  %v2498_v14 = vadd.f32 %v3230_v50, %v3180_v12 }
 0x4ae   : > { %v3182_v15 = vpop.f32.mrf.mxu0 }
 0x4af   : > { %v2525_v16 = vadd.f32 %v4368_v57, %v2498_v14  ;;  %v3183_v17 = vadd.f32 %v3182_v15, %v3181_v13 }
 0x4b1   : > { %2541 = vst [vmem:[#allocation14 + $0x70] sm:$0xff] %v2525_v16  ;;  %v2501_v18 = vadd.f32 %v3231_v63, %v3183_v17 }
 0x4b3   : > { %v2526_v19 = vadd.f32 %v4368_v57, %v2501_v18 }
 0x4b5   : > { %2542 = vst [vmem:[#allocation14 + $0x78] sm:$0xff] %v2526_v19 }
 0x4b6 PF: > { %p3275_p13 = scmp.eq.s32.totalorder %s3954_s7, 1  ;;  %s3806_s11 = smov [#allocation14]  }
 0x4b7   : > { %s2552_s26 = sshll.u32 %s3806_s11, 4  ;;  %s2553_s26 = int_to_ptr.vmem [resolvable:$true] %s2552_s26 }
 0x4b8   : > { %s3676_s12 = scalar_lea.vmem %s2553_s26, 2048  ;;  %p3683_p2 = scmp.lt.s32.totalorder %s2553_s26, %s2553_s26 }
 0x4b9   : > { %p3677_p1 = scmp.ne.s32.totalorder %s2553_s26, %s3676_s12  ;;  %p3684_p6 = scmp.lt.s32.totalorder %s3676_s12, %s3676_s12 }
 0x4bb   : > { %p3678_p4 = pnand %p3677_p1, %p3275_p13  ;;  %p3685_p9 = por %p3684_p6, %p3683_p2 }
 0x4bd   : > { %p3679_p12 = pneg %p3678_p4 }
 0x4bf   : > { %p3686_p5 = pnand %p3685_p9, %p3679_p12 }
 0x4c1   : > { %3689 = shalt.err (!%p3686_p5)
}
 0x4c2   : > { %s3807_s3 = smov 128   ;;  %s3808_s20 = smov 8  }
 0x4c3   : > { %s4475_s13 = sld [smem:[#allocation28_spill]] }
 0x4c9   : > { %3249 = dma.vmem_to_hbm [thread:$0]  (%p3275_p13), %s2553_s26, 2048, %s4475_s13, [#allocation8], %s3807_s3, %s3807_s3, %s3808_s20  }
 0x4ca   : > { %3755 = dma.done.wait (%p3275_p13), [#allocation8], 2048  }
 0x4cb   : > { %3757 = vsyncadd (%p3275_p13), [#allocation8], 4294965248 }
 0x4cc PF: > { %s32_s22 = sadd.s32 1, %s3792_s22   ;;  %s4476_s24 = smov %s4055_s0 }
 0x4cd   : > { %p29_p10 = scmp.ge.s32.totalorder %s32_s22, 4   ;;  %s4477_s0 = smov %s3764_s1 }
 0x4ce   : > { %s4478_s1 = smov %s3768_s16  ;;  %s4479_s16 = smov %s4476_s24 }
 0x4cf   : > { %s4480_s17 = smov %s3776_s18  ;;  %s4481_s18 = smov %s3780_s19 }
 0x4d0   : > { %s4482_s19 = smov %s3947_s30  ;;  %s4483_s20 = smov %s3788_s21 }
 0x4d1   : > { %s4484_s21 = smov %s4486_s23  ;;  %31 = sbr.rel (!%p29_p10) target bundleno = 26 (0x1a), region = 126 }
 0x4d6   :  { %2568 = vsyncpa [#allocation7], 1 }
 0x4d7   :  { %2570 = vsyncpa [#allocation7 + $0x1], 1 }
 0x4d8   :  { %2571 = vsyncpa [#allocation10], 1 }
 0x4d9   :  { %2573 = vsyncpa [#allocation10 + $0x1], 1 }
 0x4da   :  { %2574 = vsyncpa [#allocation13], 1 }
 0x4db   :  { %2575 = vsyncpa [#allocation8], 1 }
 0x4dc   :  { %2577 = vsyncpa [#allocation8 + $0x1], 1 }

</bundles_post_ra>
